<compile_context>
chip_gen: v7x
topology: tpu7x:2x2x1
jax: 0.10.0
libtpu: 0.0.40
codegen_flags: <defaults>
</compile_context>

<pallas_src>
import functools
import math

import numpy as np
import jax
import jax.numpy as jnp
from jax.experimental import pallas as pl
from jax.experimental.pallas import tpu as pltpu

NEG_INF = -9e15   # matches -9000000000000000.0 in the PyTorch reference
NHID_PAD = 128    # per-head hidden width padded to one full lane tile


# --------------------------- fused Pallas kernel -----------------------------

def _gat_encoder_kernel(h_ref, adj_i_ref, rn_ref, adj_g_ref,
                        wih_ref, wio_ref, wgh_ref, wgo_ref, we_ref, be_ref,
                        out_ref, *, nheads, nclass, alpha, mxu_dtype):
    """GATEncoder forward for a block of Sb sequences (one grid step)."""
    sb, n, _ = h_ref.shape

    def leaky(x):
        return jnp.where(x > 0, x, alpha * x)

    def elu(x):
        # exp(min(x, 0)) avoids overflow of the discarded positive branch.
        return jnp.where(x > 0, x, jnp.exp(jnp.minimum(x, 0.0)) - 1.0)

    def mm(x2d, w):
        # Plain 2-D MXU matmul, f32 accumulation (optionally bf16 operands).
        return jnp.dot(x2d.astype(mxu_dtype), w.astype(mxu_dtype),
                       preferred_element_type=jnp.float32)

    def attn(Wh, f1, f2, adj, ones_col):
        # e[s,i,j] = leakyrelu(f1[s,i] + f2[s,j]); masked softmax over j; att @ Wh.
        # Row-broadcast of f2 via a batched K=1 outer product (contraction on the
        # last dim of both operands -- the 'bqd,bkd->bqk' pattern).
        f2_row = jax.lax.dot_general(ones_col, f2, (((2,), (2,)), ((0,), (0,))),
                                     preferred_element_type=jnp.float32)  # (Sb,Nx,Nx)
        e = leaky(f1 + f2_row)
        att = jnp.where(adj > 0, e, NEG_INF)
        att = jnp.exp(att - jnp.max(att, axis=-1, keepdims=True))
        att = att / jnp.sum(att, axis=-1, keepdims=True)     # exact softmax (dim=1)
        return jnp.einsum('sij,sjd->sid', att.astype(mxu_dtype),
                          Wh.astype(mxu_dtype),
                          preferred_element_type=jnp.float32)

    def gat(x3, w_heads_aug, w_out_aug, adj):
        """GAT.forward (eval) batched over Sb sequences.

        w_heads_aug = [W_0pad(128) | .. | W_{H-1}pad(128) | W_0@a1_0, W_0@a2_0, ..]
        w_out_aug   = [W_out_pad | W_out_pad@a1_out | W_out_pad@a2_out]
        so one matmul yields every head's Wh, f1 and f2; all per-head Wh slices
        are 128-lane-aligned views.
        """
        sb_, nx, fin = x3.shape
        x2 = x3.reshape(sb_ * nx, fin)
        proj = mm(x2, w_heads_aug).reshape(sb_, nx, -1)
        base = nheads * NHID_PAD
        ones_col = jnp.ones((sb_, nx, 1), jnp.float32)   # hoisted out of head loop
        # Static loop: nheads is tiny; switch to lax.fori_loop(unroll=True) if it grows.
        head_outs = []
        for hd in range(nheads):
            Wh = proj[:, :, hd * NHID_PAD:(hd + 1) * NHID_PAD]        # aligned view
            f1 = proj[:, :, base + 2 * hd: base + 2 * hd + 1]
            f2 = proj[:, :, base + 2 * hd + 1: base + 2 * hd + 2]
            head_outs.append(elu(attn(Wh, f1, f2, adj, ones_col)))
        hcat = jnp.concatenate(head_outs, axis=-1)                    # (Sb,Nx,H*128)
        proj_o = mm(hcat.reshape(sb_ * nx, nheads * NHID_PAD),
                    w_out_aug).reshape(sb_, nx, -1)                   # (Sb,Nx,nclass+2)
        Wh_o = proj_o[:, :, :nclass]
        f1o = proj_o[:, :, nclass:nclass + 1]
        f2o = proj_o[:, :, nclass + 1:nclass + 2]
        hp = elu(attn(Wh_o, f1o, f2o, adj, ones_col))                 # F.elu(out_att(.))
        z = hp - jnp.max(hp, axis=-1, keepdims=True)
        return z - jnp.log(jnp.sum(jnp.exp(z), axis=-1, keepdims=True))  # log_softmax

    h3 = h_ref[...]                 # (Sb, N, 40)
    adj_i = adj_i_ref[...]          # (Sb, N, N)   row-normalised intra adjacency
    rn = rn_ref[...]                # (Sb, G, N)   row-normalised group membership R
    adj_g = adj_g_ref[...]          # (Sb, G, G)   row-normalised inter adjacency

    state_intra = gat(h3, wih_ref[...], wio_ref[...], adj_i)          # (Sb, N, 16)
    group_in = jnp.einsum('sgn,snc->sgc', rn, state_intra,
                          preferred_element_type=jnp.float32)         # (Sb, G, 16)
    group_out = gat(group_in, wgh_ref[...], wgo_ref[...], adj_g)      # (Sb, G, 16)
    # state_inter = R^T @ group_out without an R^T input: contract R_norm's group
    # axis directly (transposed-LHS contraction; MXU handles it natively).
    state_inter = jax.lax.dot_general(rn, group_out,
                                      (((1,), (1,)), ((0,), (0,))),
                                      preferred_element_type=jnp.float32)  # (Sb,N,16)

    # Final Linear(32 -> 24); the concat is folded into two row-block matmuls.
    we = we_ref[...]
    out2 = (mm(state_intra.reshape(sb * n, nclass), we[:nclass, :])
            + mm(state_inter.reshape(sb * n, nclass), we[nclass:, :])
            + be_ref[...])
    out_ref[...] = out2.reshape(sb, n, -1)


# --------------------------- weight fusion (one-time) ------------------------

def _fuse_gat_weights(gat_params):
    """Build 128-lane-padded [W_0|..|W_{H-1}| W@a1, W@a2 ...] and the padded out layer."""
    heads = gat_params["heads"]
    nhid = heads[0][0].shape[1]
    w_blocks, f_cols = [], []
    for (W, a) in heads:
        w_blocks.append(jnp.pad(W, ((0, 0), (0, NHID_PAD - nhid))))
        f_cols.append(W @ a[:nhid])          # (x@W)@a1 == x@(W@a1), folded
        f_cols.append(W @ a[nhid:])
    w_heads_aug = jnp.concatenate(w_blocks + f_cols, axis=1)    # (F, H*128 + 2H)

    W_out, a_out = gat_params["out"]
    nclass = W_out.shape[1]
    wo_blocks = [jnp.pad(W_out[h * nhid:(h + 1) * nhid, :],
                         ((0, NHID_PAD - nhid), (0, 0))) for h in range(len(heads))]
    wo_pad = jnp.concatenate(wo_blocks, axis=0)                 # (H*128, nclass)
    w_out_aug = jnp.concatenate(
        [wo_pad, wo_pad @ a_out[:nclass], wo_pad @ a_out[nclass:]], axis=1)
    return w_heads_aug, w_out_aug


# --------------------------- GATEncoder forward -------------------------------

def _round_up8(x):
    return max(8, ((x + 7) // 8) * 8)


def gat_encoder_forward(params, h_states, seq_start_end, end_group, alpha, nheads,
                        seq_block=8, matmul_dtype=jnp.float32):
    nhid, nclass = 72, 16
    # TODO(synk): torch.unique(dim=0) and the per-sequence dynamic shapes are
    # data-dependent; this graph bookkeeping runs once on the host, producing
    # padded (S, max_N, ...) batches consumed by ONE batched Pallas kernel.
    h_np = np.asarray(h_states, dtype=np.float32)
    eg = np.asarray(end_group).reshape(-1, 1)
    seqs = [(int(s), int(e)) for (s, e) in seq_start_end]
    S = len(seqs)

    per_seq = []
    for (start, end) in seqs:
        n_ped = end - start
        gvec = eg[start:end]
        eye = np.eye(n_ped, dtype=bool)
        A_g = np.tile(gvec, (1, n_ped))                   # A_g[i, j] = g[i]
        B_g = np.tile(gvec.T, (n_ped, 1))                 # B_g[i, j] = g[j]
        M_intra = ((A_g == B_g) & (A_g != 0)) | eye
        A_intra = M_intra.astype(np.float32)
        A_intra /= A_intra.sum(axis=1, keepdims=True)
        R = np.unique(M_intra, axis=0)[::-1]              # reversed unique rows
        Rf = R.astype(np.float32)
        R_norm = Rf / Rf.sum(axis=1, keepdims=True)
        per_seq.append((start, n_ped, A_intra, R_norm, R.shape[0]))

    max_N = _round_up8(max(p[1] for p in per_seq))
    max_G = _round_up8(max(p[4] for p in per_seq))

    # Sequence batching: up to `seq_block` sequences per grid step, but keep at
    # least 2 grid steps whenever S >= 2 so both v7x TensorCores get work (on
    # v5e/v6e the grid is serial, so fewer/fatter steps amortise step overhead).
    Sb = max(1, min(seq_block, -(-S // 2))) if S > 1 else 1
    n_blocks = pl.cdiv(S, Sb)
    S_pad = n_blocks * Sb

    h_pad = np.zeros((S_pad, max_N, h_np.shape[1]), np.float32)
    Ai_pad = np.zeros((S_pad, max_N, max_N), np.float32)
    Rn_pad = np.zeros((S_pad, max_G, max_N), np.float32)
    Ag_pad = np.zeros((S_pad, max_G, max_G), np.float32)
    # Self-loops everywhere keep every softmax row well defined; padded columns
    # stay exactly 0 so they remain NEG_INF-masked (exp underflow).
    Ai_pad[:, np.arange(max_N), np.arange(max_N)] = 1.0
    Ag_pad[:, np.arange(max_G), np.arange(max_G)] = 1.0
    row_idx = []
    for s, (start, n_ped, A_intra, R_norm, G_s) in enumerate(per_seq):
        h_pad[s, :n_ped] = h_np[start:start + n_ped]
        Ai_pad[s, :n_ped, :n_ped] = A_intra
        Rn_pad[s, :G_s, :n_ped] = R_norm
        Ag_pad[s, :G_s, :G_s] = 1.0 / G_s
        row_idx.extend(s * max_N + i for i in range(n_ped))

    w_ih, w_io = _fuse_gat_weights(params["gat_intra"])
    w_gh, w_go = _fuse_gat_weights(params["gat_inter"])
    we, be = params["emb_W"], params["emb_b"]

    h_in = jnp.asarray(h_pad)
    if matmul_dtype != jnp.float32:
        # v6e/v7x option: bf16 MXU operands, f32 accumulation & elementwise math.
        w_ih, w_io = w_ih.astype(matmul_dtype), w_io.astype(matmul_dtype)
        w_gh, w_go = w_gh.astype(matmul_dtype), w_go.astype(matmul_dtype)
        h_in = h_in.astype(matmul_dtype)

    def batch_spec(d1, d2):                   # per-sequence batched tensors
        return pl.BlockSpec((Sb, d1, d2), lambda b: (b, 0, 0))

    def weight_spec(w):                       # weights shared across the grid
        return pl.BlockSpec(w.shape, lambda b: (0, 0))

    # VMEM budget: double-buffered per-step blocks + resident weights + headroom
    # for the in-kernel (Sb, N, N) attention intermediates.  Capped at 64 MiB
    # (v7x physical VMEM); for much larger max_N the attention must be row-tiled.
    fsz = 4
    blk_bytes = Sb * (max_N * (h_np.shape[1] + max_N + 24)
                      + max_G * (max_N + max_G)) * fsz
    w_bytes = sum(int(np.prod(w.shape)) for w in (w_ih, w_io, w_gh, w_go, we, be)) * fsz
    work_bytes = (Sb * max_N * max_N * (2 * nheads + 6)
                  + Sb * max_N * NHID_PAD * 2 * nheads) * fsz
    vmem_limit = int(min(max(2 * blk_bytes + 2 * w_bytes + work_bytes + (8 << 20),
                             32 << 20), 64 << 20))

    out = pl.pallas_call(
        functools.partial(_gat_encoder_kernel, nheads=nheads, nclass=nclass,
                          alpha=alpha, mxu_dtype=matmul_dtype),
        grid=(n_blocks,),
        out_shape=jax.ShapeDtypeStruct((S_pad, max_N, 24), jnp.float32),
        in_specs=[
            batch_spec(max_N, h_np.shape[1]),
            batch_spec(max_N, max_N),
            batch_spec(max_G, max_N),
            batch_spec(max_G, max_G),
            weight_spec(w_ih), weight_spec(w_io),
            weight_spec(w_gh), weight_spec(w_go),
            weight_spec(we), weight_spec(be),
        ],
        out_specs=batch_spec(max_N, 24),
        compiler_params=pltpu.CompilerParams(
            dimension_semantics=("parallel",),   # shards sequence blocks across TCs
            vmem_limit_bytes=vmem_limit),
    )(h_in, jnp.asarray(Ai_pad), jnp.asarray(Rn_pad), jnp.asarray(Ag_pad),
      w_ih, w_io, w_gh, w_go, we, be)

    # Drop padded rows, restoring the original pedestrian order.
    flat = out.reshape(S_pad * max_N, 24)
    return flat[jnp.asarray(np.array(row_idx, np.int32))]


# --------------------------- parameter init ----------------------------------

def xavier_uniform(key, shape, gain):
    fan_in, fan_out = shape[0], shape[1]
    bound = gain * math.sqrt(6.0 / (fan_in + fan_out))
    return jax.random.uniform(key, shape, jnp.float32, -bound, bound)


def init_gat_params(key, nfeat, nhid, nclass, nheads, gain=1.414):
    keys = jax.random.split(key, 2 * nheads + 2)
    heads = []
    for i in range(nheads):
        W = xavier_uniform(keys[2 * i], (nfeat, nhid), gain)
        a = xavier_uniform(keys[2 * i + 1], (2 * nhid, 1), gain)
        heads.append((W, a))
    W_out = xavier_uniform(keys[-2], (nhid * nheads, nclass), gain)
    a_out = xavier_uniform(keys[-1], (2 * nclass, 1), gain)
    return {"heads": heads, "out": (W_out, a_out)}


def init_gat_encoder_params(key, n_heads):
    k1, k2, k3, k4 = jax.random.split(key, 4)
    bound = 1.0 / math.sqrt(32.0)
    return {
        "gat_intra": init_gat_params(k1, 40, 72, 16, n_heads),
        "gat_inter": init_gat_params(k2, 16, 72, 16, n_heads),
        "emb_W": xavier_uniform(k3, (32, 24), 1.0),
        "emb_b": jax.random.uniform(k4, (1, 24), jnp.float32, -bound, bound),
    }


# ------------------------------- demo -----------------------------------------

if __name__ == "__main__":
    key = jax.random.PRNGKey(0)
    n_heads = 2
    alpha = 0.2          # LeakyReLU slope; dropout = 0 (eval mode -> identity)

    k_params, k_states = jax.random.split(key)
    params = init_gat_encoder_params(k_params, n_heads)

    # 14 pedestrians, four sequences -> exercises Sb>1 batching and a 2-step grid.
    h_states = jax.random.normal(k_states, (14, 40), jnp.float32)
    seq_start_end = [(0, 3), (3, 7), (7, 10), (10, 14)]
    # group ids per pedestrian (0 = no group)
    end_group = np.array([[1], [1], [0],
                          [2], [0], [2], [0],
                          [1], [1], [1],
                          [3], [3], [0], [3]], dtype=np.int32)

    out = gat_encoder_forward(params, h_states, seq_start_end, end_group,
                              alpha, n_heads)
    out = jax.block_until_ready(out)

    assert out.shape == (14, 24), out.shape
    assert bool(jnp.all(jnp.isfinite(out)))
    print("KERNEL_OK")
</pallas_src>

<mosaic_0001>
module attributes {stable_mosaic.version = 11 : i64} {
  func.func @_gat_encoder_kernel(%arg0: i32, %arg1: memref<2x8x40xf32, #tpu.memory_space<vmem>>, %arg2: memref<2x8x8xf32, #tpu.memory_space<vmem>>, %arg3: memref<2x8x8xf32, #tpu.memory_space<vmem>>, %arg4: memref<2x8x8xf32, #tpu.memory_space<vmem>>, %arg5: memref<40x260xf32, #tpu.memory_space<vmem>>, %arg6: memref<256x18xf32, #tpu.memory_space<vmem>>, %arg7: memref<16x260xf32, #tpu.memory_space<vmem>>, %arg8: memref<256x18xf32, #tpu.memory_space<vmem>>, %arg9: memref<32x24xf32, #tpu.memory_space<vmem>>, %arg10: memref<1x24xf32, #tpu.memory_space<vmem>>, %arg11: memref<2x8x24xf32, #tpu.memory_space<vmem>>) attributes {dimension_semantics = [#tpu.dimension_semantics<parallel>], iteration_bounds = array<i64: 2>, scalar_prefetch = 0 : i64, scratch_operands = 0 : i64, tpu.core_type = #tpu.core_type<tc>, window_params = [{transform_indices = @transform_0, window_bounds = array<i64: 2, 8, 40>}, {transform_indices = @transform_1, window_bounds = array<i64: 2, 8, 8>}, {transform_indices = @transform_2, window_bounds = array<i64: 2, 8, 8>}, {transform_indices = @transform_3, window_bounds = array<i64: 2, 8, 8>}, {pipeline_mode = #tpu.pipeline_mode<synchronous>, transform_indices = @transform_4, window_bounds = array<i64: 40, 260>}, {pipeline_mode = #tpu.pipeline_mode<synchronous>, transform_indices = @transform_5, window_bounds = array<i64: 256, 18>}, {pipeline_mode = #tpu.pipeline_mode<synchronous>, transform_indices = @transform_6, window_bounds = array<i64: 16, 260>}, {pipeline_mode = #tpu.pipeline_mode<synchronous>, transform_indices = @transform_7, window_bounds = array<i64: 256, 18>}, {pipeline_mode = #tpu.pipeline_mode<synchronous>, transform_indices = @transform_8, window_bounds = array<i64: 32, 24>}, {pipeline_mode = #tpu.pipeline_mode<synchronous>, transform_indices = @transform_9, window_bounds = array<i64: 1, 24>}, {transform_indices = @transform_10, window_bounds = array<i64: 2, 8, 24>}]} {
    %c0 = arith.constant 0 : index
    %c0_0 = arith.constant 0 : index
    %c0_1 = arith.constant 0 : index
    %0 = vector.load %arg1[%c0, %c0_0, %c0_1] : memref<2x8x40xf32, #tpu.memory_space<vmem>>, vector<2x8x40xf32>
    %c0_2 = arith.constant 0 : index
    %c0_3 = arith.constant 0 : index
    %c0_4 = arith.constant 0 : index
    %1 = vector.load %arg2[%c0_2, %c0_3, %c0_4] : memref<2x8x8xf32, #tpu.memory_space<vmem>>, vector<2x8x8xf32>
    %c0_5 = arith.constant 0 : index
    %c0_6 = arith.constant 0 : index
    %c0_7 = arith.constant 0 : index
    %2 = vector.load %arg3[%c0_5, %c0_6, %c0_7] : memref<2x8x8xf32, #tpu.memory_space<vmem>>, vector<2x8x8xf32>
    %c0_8 = arith.constant 0 : index
    %c0_9 = arith.constant 0 : index
    %c0_10 = arith.constant 0 : index
    %3 = vector.load %arg4[%c0_8, %c0_9, %c0_10] : memref<2x8x8xf32, #tpu.memory_space<vmem>>, vector<2x8x8xf32>
    %c0_11 = arith.constant 0 : index
    %c0_12 = arith.constant 0 : index
    %4 = vector.load %arg5[%c0_11, %c0_12] : memref<40x260xf32, #tpu.memory_space<vmem>>, vector<40x260xf32>
    %c0_13 = arith.constant 0 : index
    %c0_14 = arith.constant 0 : index
    %5 = vector.load %arg6[%c0_13, %c0_14] : memref<256x18xf32, #tpu.memory_space<vmem>>, vector<256x18xf32>
    %6 = vector.shape_cast %0 : vector<2x8x40xf32> to vector<16x40xf32>
    %cst = arith.constant dense<0.000000e+00> : vector<16x260xf32>
    %7 = tpu.matmul %6, %4, %cst {dimension_numbers = #tpu.dot_dimension_numbers<[1], [0], [0], [1], [0, 0, 1, 1], [], []>} : vector<16x40xf32>, vector<40x260xf32>, vector<16x260xf32> -> vector<16x260xf32>
    %8 = vector.shape_cast %7 : vector<16x260xf32> to vector<2x8x260xf32>
    %cst_15 = arith.constant 1.000000e+00 : f32
    %9 = vector.broadcast %cst_15 : f32 to vector<2x8x1xf32>
    %10 = vector.extract_strided_slice %8 {offsets = [0, 0, 0], sizes = [2, 8, 128], strides = [1, 1, 1]} : vector<2x8x260xf32> to vector<2x8x128xf32>
    %11 = vector.extract_strided_slice %8 {offsets = [0, 0, 256], sizes = [2, 8, 1], strides = [1, 1, 1]} : vector<2x8x260xf32> to vector<2x8x1xf32>
    %12 = vector.extract_strided_slice %8 {offsets = [0, 0, 257], sizes = [2, 8, 1], strides = [1, 1, 1]} : vector<2x8x260xf32> to vector<2x8x1xf32>
    %cst_16 = arith.constant dense<0.000000e+00> : vector<2x8x8xf32>
    %13 = tpu.matmul %9, %12, %cst_16 {dimension_numbers = #tpu.dot_dimension_numbers<[2], [2], [1], [1], [0, 0, 0, 1, 1, 1], [0], [0]>} : vector<2x8x1xf32>, vector<2x8x1xf32>, vector<2x8x8xf32> -> vector<2x8x8xf32>
    %14 = vector.broadcast %11 : vector<2x8x1xf32> to vector<2x8x8xf32>
    %15 = arith.addf %14, %13 : vector<2x8x8xf32>
    %cst_17 = arith.constant 0.000000e+00 : f32
    %16 = vector.broadcast %cst_17 : f32 to vector<2x8x8xf32>
    %17 = arith.cmpf ogt, %15, %16 : vector<2x8x8xf32>
    %cst_18 = arith.constant 2.000000e-01 : f32
    %18 = vector.broadcast %cst_18 : f32 to vector<2x8x8xf32>
    %19 = arith.mulf %18, %15 : vector<2x8x8xf32>
    %20 = arith.select %17, %15, %19 : vector<2x8x8xi1>, vector<2x8x8xf32>
    %cst_19 = arith.constant 0.000000e+00 : f32
    %21 = vector.broadcast %cst_19 : f32 to vector<2x8x8xf32>
    %22 = arith.cmpf ogt, %1, %21 : vector<2x8x8xf32>
    %cst_20 = arith.constant -9.000000e+15 : f32
    %23 = vector.broadcast %cst_20 : f32 to vector<2x8x8xf32>
    %24 = arith.select %22, %20, %23 : vector<2x8x8xi1>, vector<2x8x8xf32>
    %cst_21 = arith.constant dense<0xFF800000> : vector<2x8xf32>
    %25 = vector.multi_reduction <maximumf>, %24, %cst_21 [2] : vector<2x8x8xf32> to vector<2x8xf32>
    %26 = vector.shape_cast %25 : vector<2x8xf32> to vector<2x8x1xf32>
    %27 = vector.broadcast %26 : vector<2x8x1xf32> to vector<2x8x8xf32>
    %28 = arith.subf %24, %27 : vector<2x8x8xf32>
    %29 = math.exp %28 : vector<2x8x8xf32>
    %cst_22 = arith.constant dense<0.000000e+00> : vector<2x8xf32>
    %30 = vector.multi_reduction <add>, %29, %cst_22 [2] : vector<2x8x8xf32> to vector<2x8xf32>
    %31 = vector.shape_cast %30 : vector<2x8xf32> to vector<2x8x1xf32>
    %32 = vector.broadcast %31 : vector<2x8x1xf32> to vector<2x8x8xf32>
    %33 = arith.divf %29, %32 : vector<2x8x8xf32>
    "tpu.trace_start"() <{level = 10 : i32, message = "sij,sjd->sid"}> : () -> ()
    %cst_23 = arith.constant dense<0.000000e+00> : vector<2x8x128xf32>
    %34 = tpu.matmul %33, %10, %cst_23 {dimension_numbers = #tpu.dot_dimension_numbers<[2], [1], [1], [2], [0, 0, 0, 1, 1, 2], [0], [0]>} : vector<2x8x8xf32>, vector<2x8x128xf32>, vector<2x8x128xf32> -> vector<2x8x128xf32>
    %cst_24 = arith.constant 0.000000e+00 : f32
    "tpu.trace_stop"() : () -> ()
    %35 = vector.broadcast %cst_24 : f32 to vector<2x8x128xf32>
    %36 = arith.cmpf ogt, %34, %35 : vector<2x8x128xf32>
    %cst_25 = arith.constant 0.000000e+00 : f32
    %37 = vector.broadcast %cst_25 : f32 to vector<2x8x128xf32>
    %38 = arith.minimumf %34, %37 : vector<2x8x128xf32>
    %39 = math.exp %38 : vector<2x8x128xf32>
    %cst_26 = arith.constant 1.000000e+00 : f32
    %40 = vector.broadcast %cst_26 : f32 to vector<2x8x128xf32>
    %41 = arith.subf %39, %40 : vector<2x8x128xf32>
    %42 = arith.select %36, %34, %41 : vector<2x8x128xi1>, vector<2x8x128xf32>
    %43 = vector.extract_strided_slice %8 {offsets = [0, 0, 128], sizes = [2, 8, 128], strides = [1, 1, 1]} : vector<2x8x260xf32> to vector<2x8x128xf32>
    %44 = vector.extract_strided_slice %8 {offsets = [0, 0, 258], sizes = [2, 8, 1], strides = [1, 1, 1]} : vector<2x8x260xf32> to vector<2x8x1xf32>
    %45 = vector.extract_strided_slice %8 {offsets = [0, 0, 259], sizes = [2, 8, 1], strides = [1, 1, 1]} : vector<2x8x260xf32> to vector<2x8x1xf32>
    %cst_27 = arith.constant dense<0.000000e+00> : vector<2x8x8xf32>
    %46 = tpu.matmul %9, %45, %cst_27 {dimension_numbers = #tpu.dot_dimension_numbers<[2], [2], [1], [1], [0, 0, 0, 1, 1, 1], [0], [0]>} : vector<2x8x1xf32>, vector<2x8x1xf32>, vector<2x8x8xf32> -> vector<2x8x8xf32>
    %47 = vector.broadcast %44 : vector<2x8x1xf32> to vector<2x8x8xf32>
    %48 = arith.addf %47, %46 : vector<2x8x8xf32>
    %cst_28 = arith.constant 0.000000e+00 : f32
    %49 = vector.broadcast %cst_28 : f32 to vector<2x8x8xf32>
    %50 = arith.cmpf ogt, %48, %49 : vector<2x8x8xf32>
    %cst_29 = arith.constant 2.000000e-01 : f32
    %51 = vector.broadcast %cst_29 : f32 to vector<2x8x8xf32>
    %52 = arith.mulf %51, %48 : vector<2x8x8xf32>
    %53 = arith.select %50, %48, %52 : vector<2x8x8xi1>, vector<2x8x8xf32>
    %cst_30 = arith.constant 0.000000e+00 : f32
    %54 = vector.broadcast %cst_30 : f32 to vector<2x8x8xf32>
    %55 = arith.cmpf ogt, %1, %54 : vector<2x8x8xf32>
    %cst_31 = arith.constant -9.000000e+15 : f32
    %56 = vector.broadcast %cst_31 : f32 to vector<2x8x8xf32>
    %57 = arith.select %55, %53, %56 : vector<2x8x8xi1>, vector<2x8x8xf32>
    %cst_32 = arith.constant dense<0xFF800000> : vector<2x8xf32>
    %58 = vector.multi_reduction <maximumf>, %57, %cst_32 [2] : vector<2x8x8xf32> to vector<2x8xf32>
    %59 = vector.shape_cast %58 : vector<2x8xf32> to vector<2x8x1xf32>
    %60 = vector.broadcast %59 : vector<2x8x1xf32> to vector<2x8x8xf32>
    %61 = arith.subf %57, %60 : vector<2x8x8xf32>
    %62 = math.exp %61 : vector<2x8x8xf32>
    %cst_33 = arith.constant dense<0.000000e+00> : vector<2x8xf32>
    %63 = vector.multi_reduction <add>, %62, %cst_33 [2] : vector<2x8x8xf32> to vector<2x8xf32>
    %64 = vector.shape_cast %63 : vector<2x8xf32> to vector<2x8x1xf32>
    %65 = vector.broadcast %64 : vector<2x8x1xf32> to vector<2x8x8xf32>
    %66 = arith.divf %62, %65 : vector<2x8x8xf32>
    "tpu.trace_start"() <{level = 10 : i32, message = "sij,sjd->sid"}> : () -> ()
    %cst_34 = arith.constant dense<0.000000e+00> : vector<2x8x128xf32>
    %67 = tpu.matmul %66, %43, %cst_34 {dimension_numbers = #tpu.dot_dimension_numbers<[2], [1], [1], [2], [0, 0, 0, 1, 1, 2], [0], [0]>} : vector<2x8x8xf32>, vector<2x8x128xf32>, vector<2x8x128xf32> -> vector<2x8x128xf32>
    %cst_35 = arith.constant 0.000000e+00 : f32
    "tpu.trace_stop"() : () -> ()
    %68 = vector.broadcast %cst_35 : f32 to vector<2x8x128xf32>
    %69 = arith.cmpf ogt, %67, %68 : vector<2x8x128xf32>
    %cst_36 = arith.constant 0.000000e+00 : f32
    %70 = vector.broadcast %cst_36 : f32 to vector<2x8x128xf32>
    %71 = arith.minimumf %67, %70 : vector<2x8x128xf32>
    %72 = math.exp %71 : vector<2x8x128xf32>
    %cst_37 = arith.constant 1.000000e+00 : f32
    %73 = vector.broadcast %cst_37 : f32 to vector<2x8x128xf32>
    %74 = arith.subf %72, %73 : vector<2x8x128xf32>
    %75 = arith.select %69, %67, %74 : vector<2x8x128xi1>, vector<2x8x128xf32>
    %76 = tpu.concatenate %42, %75 in 2 : vector<2x8x128xf32>, vector<2x8x128xf32> -> vector<2x8x256xf32>
    %77 = vector.shape_cast %76 : vector<2x8x256xf32> to vector<16x256xf32>
    %cst_38 = arith.constant dense<0.000000e+00> : vector<16x18xf32>
    %78 = tpu.matmul %77, %5, %cst_38 {dimension_numbers = #tpu.dot_dimension_numbers<[1], [0], [0], [1], [0, 0, 1, 1], [], []>} : vector<16x256xf32>, vector<256x18xf32>, vector<16x18xf32> -> vector<16x18xf32>
    %79 = vector.shape_cast %78 : vector<16x18xf32> to vector<2x8x18xf32>
    %80 = vector.extract_strided_slice %79 {offsets = [0, 0, 0], sizes = [2, 8, 16], strides = [1, 1, 1]} : vector<2x8x18xf32> to vector<2x8x16xf32>
    %81 = vector.extract_strided_slice %79 {offsets = [0, 0, 16], sizes = [2, 8, 1], strides = [1, 1, 1]} : vector<2x8x18xf32> to vector<2x8x1xf32>
    %82 = vector.extract_strided_slice %79 {offsets = [0, 0, 17], sizes = [2, 8, 1], strides = [1, 1, 1]} : vector<2x8x18xf32> to vector<2x8x1xf32>
    %cst_39 = arith.constant dense<0.000000e+00> : vector<2x8x8xf32>
    %83 = tpu.matmul %9, %82, %cst_39 {dimension_numbers = #tpu.dot_dimension_numbers<[2], [2], [1], [1], [0, 0, 0, 1, 1, 1], [0], [0]>} : vector<2x8x1xf32>, vector<2x8x1xf32>, vector<2x8x8xf32> -> vector<2x8x8xf32>
    %84 = vector.broadcast %81 : vector<2x8x1xf32> to vector<2x8x8xf32>
    %85 = arith.addf %84, %83 : vector<2x8x8xf32>
    %cst_40 = arith.constant 0.000000e+00 : f32
    %86 = vector.broadcast %cst_40 : f32 to vector<2x8x8xf32>
    %87 = arith.cmpf ogt, %85, %86 : vector<2x8x8xf32>
    %cst_41 = arith.constant 2.000000e-01 : f32
    %88 = vector.broadcast %cst_41 : f32 to vector<2x8x8xf32>
    %89 = arith.mulf %88, %85 : vector<2x8x8xf32>
    %90 = arith.select %87, %85, %89 : vector<2x8x8xi1>, vector<2x8x8xf32>
    %cst_42 = arith.constant 0.000000e+00 : f32
    %91 = vector.broadcast %cst_42 : f32 to vector<2x8x8xf32>
    %92 = arith.cmpf ogt, %1, %91 : vector<2x8x8xf32>
    %cst_43 = arith.constant -9.000000e+15 : f32
    %93 = vector.broadcast %cst_43 : f32 to vector<2x8x8xf32>
    %94 = arith.select %92, %90, %93 : vector<2x8x8xi1>, vector<2x8x8xf32>
    %cst_44 = arith.constant dense<0xFF800000> : vector<2x8xf32>
    %95 = vector.multi_reduction <maximumf>, %94, %cst_44 [2] : vector<2x8x8xf32> to vector<2x8xf32>
    %96 = vector.shape_cast %95 : vector<2x8xf32> to vector<2x8x1xf32>
    %97 = vector.broadcast %96 : vector<2x8x1xf32> to vector<2x8x8xf32>
    %98 = arith.subf %94, %97 : vector<2x8x8xf32>
    %99 = math.exp %98 : vector<2x8x8xf32>
    %cst_45 = arith.constant dense<0.000000e+00> : vector<2x8xf32>
    %100 = vector.multi_reduction <add>, %99, %cst_45 [2] : vector<2x8x8xf32> to vector<2x8xf32>
    %101 = vector.shape_cast %100 : vector<2x8xf32> to vector<2x8x1xf32>
    %102 = vector.broadcast %101 : vector<2x8x1xf32> to vector<2x8x8xf32>
    %103 = arith.divf %99, %102 : vector<2x8x8xf32>
    "tpu.trace_start"() <{level = 10 : i32, message = "sij,sjd->sid"}> : () -> ()
    %cst_46 = arith.constant dense<0.000000e+00> : vector<2x8x16xf32>
    %104 = tpu.matmul %103, %80, %cst_46 {dimension_numbers = #tpu.dot_dimension_numbers<[2], [1], [1], [2], [0, 0, 0, 1, 1, 2], [0], [0]>} : vector<2x8x8xf32>, vector<2x8x16xf32>, vector<2x8x16xf32> -> vector<2x8x16xf32>
    %cst_47 = arith.constant 0.000000e+00 : f32
    "tpu.trace_stop"() : () -> ()
    %105 = vector.broadcast %cst_47 : f32 to vector<2x8x16xf32>
    %106 = arith.cmpf ogt, %104, %105 : vector<2x8x16xf32>
    %cst_48 = arith.constant 0.000000e+00 : f32
    %107 = vector.broadcast %cst_48 : f32 to vector<2x8x16xf32>
    %108 = arith.minimumf %104, %107 : vector<2x8x16xf32>
    %109 = math.exp %108 : vector<2x8x16xf32>
    %cst_49 = arith.constant 1.000000e+00 : f32
    %110 = vector.broadcast %cst_49 : f32 to vector<2x8x16xf32>
    %111 = arith.subf %109, %110 : vector<2x8x16xf32>
    %112 = arith.select %106, %104, %111 : vector<2x8x16xi1>, vector<2x8x16xf32>
    %cst_50 = arith.constant dense<0xFF800000> : vector<2x8xf32>
    %113 = vector.multi_reduction <maximumf>, %112, %cst_50 [2] : vector<2x8x16xf32> to vector<2x8xf32>
    %114 = vector.shape_cast %113 : vector<2x8xf32> to vector<2x8x1xf32>
    %115 = vector.broadcast %114 : vector<2x8x1xf32> to vector<2x8x16xf32>
    %116 = arith.subf %112, %115 : vector<2x8x16xf32>
    %117 = math.exp %116 : vector<2x8x16xf32>
    %cst_51 = arith.constant dense<0.000000e+00> : vector<2x8xf32>
    %118 = vector.multi_reduction <add>, %117, %cst_51 [2] : vector<2x8x16xf32> to vector<2x8xf32>
    %119 = vector.shape_cast %118 : vector<2x8xf32> to vector<2x8x1xf32>
    %120 = math.log %119 : vector<2x8x1xf32>
    %121 = vector.broadcast %120 : vector<2x8x1xf32> to vector<2x8x16xf32>
    %122 = arith.subf %116, %121 : vector<2x8x16xf32>
    "tpu.trace_start"() <{level = 10 : i32, message = "sgn,snc->sgc"}> : () -> ()
    %cst_52 = arith.constant dense<0.000000e+00> : vector<2x8x16xf32>
    %123 = tpu.matmul %2, %122, %cst_52 {dimension_numbers = #tpu.dot_dimension_numbers<[2], [1], [1], [2], [0, 0, 0, 1, 1, 2], [0], [0]>} : vector<2x8x8xf32>, vector<2x8x16xf32>, vector<2x8x16xf32> -> vector<2x8x16xf32>
    "tpu.trace_stop"() : () -> ()
    %c0_53 = arith.constant 0 : index
    %c0_54 = arith.constant 0 : index
    %124 = vector.load %arg7[%c0_53, %c0_54] : memref<16x260xf32, #tpu.memory_space<vmem>>, vector<16x260xf32>
    %c0_55 = arith.constant 0 : index
    %c0_56 = arith.constant 0 : index
    %125 = vector.load %arg8[%c0_55, %c0_56] : memref<256x18xf32, #tpu.memory_space<vmem>>, vector<256x18xf32>
    %126 = vector.shape_cast %123 : vector<2x8x16xf32> to vector<16x16xf32>
    %cst_57 = arith.constant dense<0.000000e+00> : vector<16x260xf32>
    %127 = tpu.matmul %126, %124, %cst_57 {dimension_numbers = #tpu.dot_dimension_numbers<[1], [0], [0], [1], [0, 0, 1, 1], [], []>} : vector<16x16xf32>, vector<16x260xf32>, vector<16x260xf32> -> vector<16x260xf32>
    %128 = vector.shape_cast %127 : vector<16x260xf32> to vector<2x8x260xf32>
    %cst_58 = arith.constant 1.000000e+00 : f32
    %129 = vector.broadcast %cst_58 : f32 to vector<2x8x1xf32>
    %130 = vector.extract_strided_slice %128 {offsets = [0, 0, 0], sizes = [2, 8, 128], strides = [1, 1, 1]} : vector<2x8x260xf32> to vector<2x8x128xf32>
    %131 = vector.extract_strided_slice %128 {offsets = [0, 0, 256], sizes = [2, 8, 1], strides = [1, 1, 1]} : vector<2x8x260xf32> to vector<2x8x1xf32>
    %132 = vector.extract_strided_slice %128 {offsets = [0, 0, 257], sizes = [2, 8, 1], strides = [1, 1, 1]} : vector<2x8x260xf32> to vector<2x8x1xf32>
    %cst_59 = arith.constant dense<0.000000e+00> : vector<2x8x8xf32>
    %133 = tpu.matmul %129, %132, %cst_59 {dimension_numbers = #tpu.dot_dimension_numbers<[2], [2], [1], [1], [0, 0, 0, 1, 1, 1], [0], [0]>} : vector<2x8x1xf32>, vector<2x8x1xf32>, vector<2x8x8xf32> -> vector<2x8x8xf32>
    %134 = vector.broadcast %131 : vector<2x8x1xf32> to vector<2x8x8xf32>
    %135 = arith.addf %134, %133 : vector<2x8x8xf32>
    %cst_60 = arith.constant 0.000000e+00 : f32
    %136 = vector.broadcast %cst_60 : f32 to vector<2x8x8xf32>
    %137 = arith.cmpf ogt, %135, %136 : vector<2x8x8xf32>
    %cst_61 = arith.constant 2.000000e-01 : f32
    %138 = vector.broadcast %cst_61 : f32 to vector<2x8x8xf32>
    %139 = arith.mulf %138, %135 : vector<2x8x8xf32>
    %140 = arith.select %137, %135, %139 : vector<2x8x8xi1>, vector<2x8x8xf32>
    %cst_62 = arith.constant 0.000000e+00 : f32
    %141 = vector.broadcast %cst_62 : f32 to vector<2x8x8xf32>
    %142 = arith.cmpf ogt, %3, %141 : vector<2x8x8xf32>
    %cst_63 = arith.constant -9.000000e+15 : f32
    %143 = vector.broadcast %cst_63 : f32 to vector<2x8x8xf32>
    %144 = arith.select %142, %140, %143 : vector<2x8x8xi1>, vector<2x8x8xf32>
    %cst_64 = arith.constant dense<0xFF800000> : vector<2x8xf32>
    %145 = vector.multi_reduction <maximumf>, %144, %cst_64 [2] : vector<2x8x8xf32> to vector<2x8xf32>
    %146 = vector.shape_cast %145 : vector<2x8xf32> to vector<2x8x1xf32>
    %147 = vector.broadcast %146 : vector<2x8x1xf32> to vector<2x8x8xf32>
    %148 = arith.subf %144, %147 : vector<2x8x8xf32>
    %149 = math.exp %148 : vector<2x8x8xf32>
    %cst_65 = arith.constant dense<0.000000e+00> : vector<2x8xf32>
    %150 = vector.multi_reduction <add>, %149, %cst_65 [2] : vector<2x8x8xf32> to vector<2x8xf32>
    %151 = vector.shape_cast %150 : vector<2x8xf32> to vector<2x8x1xf32>
    %152 = vector.broadcast %151 : vector<2x8x1xf32> to vector<2x8x8xf32>
    %153 = arith.divf %149, %152 : vector<2x8x8xf32>
    "tpu.trace_start"() <{level = 10 : i32, message = "sij,sjd->sid"}> : () -> ()
    %cst_66 = arith.constant dense<0.000000e+00> : vector<2x8x128xf32>
    %154 = tpu.matmul %153, %130, %cst_66 {dimension_numbers = #tpu.dot_dimension_numbers<[2], [1], [1], [2], [0, 0, 0, 1, 1, 2], [0], [0]>} : vector<2x8x8xf32>, vector<2x8x128xf32>, vector<2x8x128xf32> -> vector<2x8x128xf32>
    %cst_67 = arith.constant 0.000000e+00 : f32
    "tpu.trace_stop"() : () -> ()
    %155 = vector.broadcast %cst_67 : f32 to vector<2x8x128xf32>
    %156 = arith.cmpf ogt, %154, %155 : vector<2x8x128xf32>
    %cst_68 = arith.constant 0.000000e+00 : f32
    %157 = vector.broadcast %cst_68 : f32 to vector<2x8x128xf32>
    %158 = arith.minimumf %154, %157 : vector<2x8x128xf32>
    %159 = math.exp %158 : vector<2x8x128xf32>
    %cst_69 = arith.constant 1.000000e+00 : f32
    %160 = vector.broadcast %cst_69 : f32 to vector<2x8x128xf32>
    %161 = arith.subf %159, %160 : vector<2x8x128xf32>
    %162 = arith.select %156, %154, %161 : vector<2x8x128xi1>, vector<2x8x128xf32>
    %163 = vector.extract_strided_slice %128 {offsets = [0, 0, 128], sizes = [2, 8, 128], strides = [1, 1, 1]} : vector<2x8x260xf32> to vector<2x8x128xf32>
    %164 = vector.extract_strided_slice %128 {offsets = [0, 0, 258], sizes = [2, 8, 1], strides = [1, 1, 1]} : vector<2x8x260xf32> to vector<2x8x1xf32>
    %165 = vector.extract_strided_slice %128 {offsets = [0, 0, 259], sizes = [2, 8, 1], strides = [1, 1, 1]} : vector<2x8x260xf32> to vector<2x8x1xf32>
    %cst_70 = arith.constant dense<0.000000e+00> : vector<2x8x8xf32>
    %166 = tpu.matmul %129, %165, %cst_70 {dimension_numbers = #tpu.dot_dimension_numbers<[2], [2], [1], [1], [0, 0, 0, 1, 1, 1], [0], [0]>} : vector<2x8x1xf32>, vector<2x8x1xf32>, vector<2x8x8xf32> -> vector<2x8x8xf32>
    %167 = vector.broadcast %164 : vector<2x8x1xf32> to vector<2x8x8xf32>
    %168 = arith.addf %167, %166 : vector<2x8x8xf32>
    %cst_71 = arith.constant 0.000000e+00 : f32
    %169 = vector.broadcast %cst_71 : f32 to vector<2x8x8xf32>
    %170 = arith.cmpf ogt, %168, %169 : vector<2x8x8xf32>
    %cst_72 = arith.constant 2.000000e-01 : f32
    %171 = vector.broadcast %cst_72 : f32 to vector<2x8x8xf32>
    %172 = arith.mulf %171, %168 : vector<2x8x8xf32>
    %173 = arith.select %170, %168, %172 : vector<2x8x8xi1>, vector<2x8x8xf32>
    %cst_73 = arith.constant 0.000000e+00 : f32
    %174 = vector.broadcast %cst_73 : f32 to vector<2x8x8xf32>
    %175 = arith.cmpf ogt, %3, %174 : vector<2x8x8xf32>
    %cst_74 = arith.constant -9.000000e+15 : f32
    %176 = vector.broadcast %cst_74 : f32 to vector<2x8x8xf32>
    %177 = arith.select %175, %173, %176 : vector<2x8x8xi1>, vector<2x8x8xf32>
    %cst_75 = arith.constant dense<0xFF800000> : vector<2x8xf32>
    %178 = vector.multi_reduction <maximumf>, %177, %cst_75 [2] : vector<2x8x8xf32> to vector<2x8xf32>
    %179 = vector.shape_cast %178 : vector<2x8xf32> to vector<2x8x1xf32>
    %180 = vector.broadcast %179 : vector<2x8x1xf32> to vector<2x8x8xf32>
    %181 = arith.subf %177, %180 : vector<2x8x8xf32>
    %182 = math.exp %181 : vector<2x8x8xf32>
    %cst_76 = arith.constant dense<0.000000e+00> : vector<2x8xf32>
    %183 = vector.multi_reduction <add>, %182, %cst_76 [2] : vector<2x8x8xf32> to vector<2x8xf32>
    %184 = vector.shape_cast %183 : vector<2x8xf32> to vector<2x8x1xf32>
    %185 = vector.broadcast %184 : vector<2x8x1xf32> to vector<2x8x8xf32>
    %186 = arith.divf %182, %185 : vector<2x8x8xf32>
    "tpu.trace_start"() <{level = 10 : i32, message = "sij,sjd->sid"}> : () -> ()
    %cst_77 = arith.constant dense<0.000000e+00> : vector<2x8x128xf32>
    %187 = tpu.matmul %186, %163, %cst_77 {dimension_numbers = #tpu.dot_dimension_numbers<[2], [1], [1], [2], [0, 0, 0, 1, 1, 2], [0], [0]>} : vector<2x8x8xf32>, vector<2x8x128xf32>, vector<2x8x128xf32> -> vector<2x8x128xf32>
    %cst_78 = arith.constant 0.000000e+00 : f32
    "tpu.trace_stop"() : () -> ()
    %188 = vector.broadcast %cst_78 : f32 to vector<2x8x128xf32>
    %189 = arith.cmpf ogt, %187, %188 : vector<2x8x128xf32>
    %cst_79 = arith.constant 0.000000e+00 : f32
    %190 = vector.broadcast %cst_79 : f32 to vector<2x8x128xf32>
    %191 = arith.minimumf %187, %190 : vector<2x8x128xf32>
    %192 = math.exp %191 : vector<2x8x128xf32>
    %cst_80 = arith.constant 1.000000e+00 : f32
    %193 = vector.broadcast %cst_80 : f32 to vector<2x8x128xf32>
    %194 = arith.subf %192, %193 : vector<2x8x128xf32>
    %195 = arith.select %189, %187, %194 : vector<2x8x128xi1>, vector<2x8x128xf32>
    %196 = tpu.concatenate %162, %195 in 2 : vector<2x8x128xf32>, vector<2x8x128xf32> -> vector<2x8x256xf32>
    %197 = vector.shape_cast %196 : vector<2x8x256xf32> to vector<16x256xf32>
    %cst_81 = arith.constant dense<0.000000e+00> : vector<16x18xf32>
    %198 = tpu.matmul %197, %125, %cst_81 {dimension_numbers = #tpu.dot_dimension_numbers<[1], [0], [0], [1], [0, 0, 1, 1], [], []>} : vector<16x256xf32>, vector<256x18xf32>, vector<16x18xf32> -> vector<16x18xf32>
    %199 = vector.shape_cast %198 : vector<16x18xf32> to vector<2x8x18xf32>
    %200 = vector.extract_strided_slice %199 {offsets = [0, 0, 0], sizes = [2, 8, 16], strides = [1, 1, 1]} : vector<2x8x18xf32> to vector<2x8x16xf32>
    %201 = vector.extract_strided_slice %199 {offsets = [0, 0, 16], sizes = [2, 8, 1], strides = [1, 1, 1]} : vector<2x8x18xf32> to vector<2x8x1xf32>
    %202 = vector.extract_strided_slice %199 {offsets = [0, 0, 17], sizes = [2, 8, 1], strides = [1, 1, 1]} : vector<2x8x18xf32> to vector<2x8x1xf32>
    %cst_82 = arith.constant dense<0.000000e+00> : vector<2x8x8xf32>
    %203 = tpu.matmul %129, %202, %cst_82 {dimension_numbers = #tpu.dot_dimension_numbers<[2], [2], [1], [1], [0, 0, 0, 1, 1, 1], [0], [0]>} : vector<2x8x1xf32>, vector<2x8x1xf32>, vector<2x8x8xf32> -> vector<2x8x8xf32>
    %204 = vector.broadcast %201 : vector<2x8x1xf32> to vector<2x8x8xf32>
    %205 = arith.addf %204, %203 : vector<2x8x8xf32>
    %cst_83 = arith.constant 0.000000e+00 : f32
    %206 = vector.broadcast %cst_83 : f32 to vector<2x8x8xf32>
    %207 = arith.cmpf ogt, %205, %206 : vector<2x8x8xf32>
    %cst_84 = arith.constant 2.000000e-01 : f32
    %208 = vector.broadcast %cst_84 : f32 to vector<2x8x8xf32>
    %209 = arith.mulf %208, %205 : vector<2x8x8xf32>
    %210 = arith.select %207, %205, %209 : vector<2x8x8xi1>, vector<2x8x8xf32>
    %cst_85 = arith.constant 0.000000e+00 : f32
    %211 = vector.broadcast %cst_85 : f32 to vector<2x8x8xf32>
    %212 = arith.cmpf ogt, %3, %211 : vector<2x8x8xf32>
    %cst_86 = arith.constant -9.000000e+15 : f32
    %213 = vector.broadcast %cst_86 : f32 to vector<2x8x8xf32>
    %214 = arith.select %212, %210, %213 : vector<2x8x8xi1>, vector<2x8x8xf32>
    %cst_87 = arith.constant dense<0xFF800000> : vector<2x8xf32>
    %215 = vector.multi_reduction <maximumf>, %214, %cst_87 [2] : vector<2x8x8xf32> to vector<2x8xf32>
    %216 = vector.shape_cast %215 : vector<2x8xf32> to vector<2x8x1xf32>
    %217 = vector.broadcast %216 : vector<2x8x1xf32> to vector<2x8x8xf32>
    %218 = arith.subf %214, %217 : vector<2x8x8xf32>
    %219 = math.exp %218 : vector<2x8x8xf32>
    %cst_88 = arith.constant dense<0.000000e+00> : vector<2x8xf32>
    %220 = vector.multi_reduction <add>, %219, %cst_88 [2] : vector<2x8x8xf32> to vector<2x8xf32>
    %221 = vector.shape_cast %220 : vector<2x8xf32> to vector<2x8x1xf32>
    %222 = vector.broadcast %221 : vector<2x8x1xf32> to vector<2x8x8xf32>
    %223 = arith.divf %219, %222 : vector<2x8x8xf32>
    "tpu.trace_start"() <{level = 10 : i32, message = "sij,sjd->sid"}> : () -> ()
    %cst_89 = arith.constant dense<0.000000e+00> : vector<2x8x16xf32>
    %224 = tpu.matmul %223, %200, %cst_89 {dimension_numbers = #tpu.dot_dimension_numbers<[2], [1], [1], [2], [0, 0, 0, 1, 1, 2], [0], [0]>} : vector<2x8x8xf32>, vector<2x8x16xf32>, vector<2x8x16xf32> -> vector<2x8x16xf32>
    %cst_90 = arith.constant 0.000000e+00 : f32
    "tpu.trace_stop"() : () -> ()
    %225 = vector.broadcast %cst_90 : f32 to vector<2x8x16xf32>
    %226 = arith.cmpf ogt, %224, %225 : vector<2x8x16xf32>
    %cst_91 = arith.constant 0.000000e+00 : f32
    %227 = vector.broadcast %cst_91 : f32 to vector<2x8x16xf32>
    %228 = arith.minimumf %224, %227 : vector<2x8x16xf32>
    %229 = math.exp %228 : vector<2x8x16xf32>
    %cst_92 = arith.constant 1.000000e+00 : f32
    %230 = vector.broadcast %cst_92 : f32 to vector<2x8x16xf32>
    %231 = arith.subf %229, %230 : vector<2x8x16xf32>
    %232 = arith.select %226, %224, %231 : vector<2x8x16xi1>, vector<2x8x16xf32>
    %cst_93 = arith.constant dense<0xFF800000> : vector<2x8xf32>
    %233 = vector.multi_reduction <maximumf>, %232, %cst_93 [2] : vector<2x8x16xf32> to vector<2x8xf32>
    %234 = vector.shape_cast %233 : vector<2x8xf32> to vector<2x8x1xf32>
    %235 = vector.broadcast %234 : vector<2x8x1xf32> to vector<2x8x16xf32>
    %236 = arith.subf %232, %235 : vector<2x8x16xf32>
    %237 = math.exp %236 : vector<2x8x16xf32>
    %cst_94 = arith.constant dense<0.000000e+00> : vector<2x8xf32>
    %238 = vector.multi_reduction <add>, %237, %cst_94 [2] : vector<2x8x16xf32> to vector<2x8xf32>
    %239 = vector.shape_cast %238 : vector<2x8xf32> to vector<2x8x1xf32>
    %240 = math.log %239 : vector<2x8x1xf32>
    %241 = vector.broadcast %240 : vector<2x8x1xf32> to vector<2x8x16xf32>
    %242 = arith.subf %236, %241 : vector<2x8x16xf32>
    %cst_95 = arith.constant dense<0.000000e+00> : vector<2x8x16xf32>
    %243 = tpu.matmul %2, %242, %cst_95 {dimension_numbers = #tpu.dot_dimension_numbers<[1], [1], [2], [2], [0, 0, 0, 2, 1, 2], [0], [0]>} : vector<2x8x8xf32>, vector<2x8x16xf32>, vector<2x8x16xf32> -> vector<2x8x16xf32>
    %c0_96 = arith.constant 0 : index
    %c0_97 = arith.constant 0 : index
    %244 = vector.load %arg9[%c0_96, %c0_97] : memref<32x24xf32, #tpu.memory_space<vmem>>, vector<32x24xf32>
    %245 = vector.shape_cast %122 : vector<2x8x16xf32> to vector<16x16xf32>
    %246 = vector.extract_strided_slice %244 {offsets = [0, 0], sizes = [16, 24], strides = [1, 1]} : vector<32x24xf32> to vector<16x24xf32>
    %cst_98 = arith.constant dense<0.000000e+00> : vector<16x24xf32>
    %247 = tpu.matmul %245, %246, %cst_98 {dimension_numbers = #tpu.dot_dimension_numbers<[1], [0], [0], [1], [0, 0, 1, 1], [], []>} : vector<16x16xf32>, vector<16x24xf32>, vector<16x24xf32> -> vector<16x24xf32>
    %248 = vector.shape_cast %243 : vector<2x8x16xf32> to vector<16x16xf32>
    %249 = vector.extract_strided_slice %244 {offsets = [16, 0], sizes = [16, 24], strides = [1, 1]} : vector<32x24xf32> to vector<16x24xf32>
    %cst_99 = arith.constant dense<0.000000e+00> : vector<16x24xf32>
    %250 = tpu.matmul %248, %249, %cst_99 {dimension_numbers = #tpu.dot_dimension_numbers<[1], [0], [0], [1], [0, 0, 1, 1], [], []>} : vector<16x16xf32>, vector<16x24xf32>, vector<16x24xf32> -> vector<16x24xf32>
    %251 = arith.addf %247, %250 : vector<16x24xf32>
    %c0_100 = arith.constant 0 : index
    %c0_101 = arith.constant 0 : index
    %252 = vector.load %arg10[%c0_100, %c0_101] : memref<1x24xf32, #tpu.memory_space<vmem>>, vector<1x24xf32>
    %253 = vector.broadcast %252 : vector<1x24xf32> to vector<16x24xf32>
    %254 = arith.addf %251, %253 : vector<16x24xf32>
    %255 = vector.shape_cast %254 : vector<16x24xf32> to vector<2x8x24xf32>
    %c0_102 = arith.constant 0 : index
    %c0_103 = arith.constant 0 : index
    %c0_104 = arith.constant 0 : index
    %256 = vector.load %arg11[%c0_102, %c0_103, %c0_104] : memref<2x8x24xf32, #tpu.memory_space<vmem>>, vector<2x8x24xf32>
    tpu.vector_store %arg11[%c0_102, %c0_103, %c0_104], %255 {strides = array<i32>} : memref<2x8x24xf32, #tpu.memory_space<vmem>>, vector<2x8x24xf32>,
    return
  }
  func.func @transform_0(%arg0: i32) -> (i32, i32, i32) {
    %c0_i32 = arith.constant 0 : i32
    %c0_i32_0 = arith.constant 0 : i32
    %c0_i32_1 = arith.constant 0 : i32
    return %arg0, %c0_i32, %c0_i32_0 : i32, i32, i32
  }
  func.func @transform_1(%arg0: i32) -> (i32, i32, i32) {
    %c0_i32 = arith.constant 0 : i32
    %c0_i32_0 = arith.constant 0 : i32
    %c0_i32_1 = arith.constant 0 : i32
    return %arg0, %c0_i32, %c0_i32_0 : i32, i32, i32
  }
  func.func @transform_2(%arg0: i32) -> (i32, i32, i32) {
    %c0_i32 = arith.constant 0 : i32
    %c0_i32_0 = arith.constant 0 : i32
    %c0_i32_1 = arith.constant 0 : i32
    return %arg0, %c0_i32, %c0_i32_0 : i32, i32, i32
  }
  func.func @transform_3(%arg0: i32) -> (i32, i32, i32) {
    %c0_i32 = arith.constant 0 : i32
    %c0_i32_0 = arith.constant 0 : i32
    %c0_i32_1 = arith.constant 0 : i32
    return %arg0, %c0_i32, %c0_i32_0 : i32, i32, i32
  }
  func.func @transform_4(%arg0: i32) -> (i32, i32) {
    %c0_i32 = arith.constant 0 : i32
    %c0_i32_0 = arith.constant 0 : i32
    %c0_i32_1 = arith.constant 0 : i32
    return %c0_i32, %c0_i32_0 : i32, i32
  }
  func.func @transform_5(%arg0: i32) -> (i32, i32) {
    %c0_i32 = arith.constant 0 : i32
    %c0_i32_0 = arith.constant 0 : i32
    %c0_i32_1 = arith.constant 0 : i32
    return %c0_i32, %c0_i32_0 : i32, i32
  }
  func.func @transform_6(%arg0: i32) -> (i32, i32) {
    %c0_i32 = arith.constant 0 : i32
    %c0_i32_0 = arith.constant 0 : i32
    %c0_i32_1 = arith.constant 0 : i32
    return %c0_i32, %c0_i32_0 : i32, i32
  }
  func.func @transform_7(%arg0: i32) -> (i32, i32) {
    %c0_i32 = arith.constant 0 : i32
    %c0_i32_0 = arith.constant 0 : i32
    %c0_i32_1 = arith.constant 0 : i32
    return %c0_i32, %c0_i32_0 : i32, i32
  }
  func.func @transform_8(%arg0: i32) -> (i32, i32) {
    %c0_i32 = arith.constant 0 : i32
    %c0_i32_0 = arith.constant 0 : i32
    %c0_i32_1 = arith.constant 0 : i32
    return %c0_i32, %c0_i32_0 : i32, i32
  }
  func.func @transform_9(%arg0: i32) -> (i32, i32) {
    %c0_i32 = arith.constant 0 : i32
    %c0_i32_0 = arith.constant 0 : i32
    %c0_i32_1 = arith.constant 0 : i32
    return %c0_i32, %c0_i32_0 : i32, i32
  }
  func.func @transform_10(%arg0: i32) -> (i32, i32, i32) {
    %c0_i32 = arith.constant 0 : i32
    %c0_i32_0 = arith.constant 0 : i32
    %c0_i32_1 = arith.constant 0 : i32
    return %arg0, %c0_i32, %c0_i32_0 : i32, i32, i32
  }
}

</mosaic_0001>

<bundles_post_ra>
// kernel: tpu_custom_call.1
= control target key start
LH: loop header
LB: loop body
LE: loop exit
PB: predicated region body
PF: predicated region fallthrough
CT: control target
= control target key end

     0   :  { %s5244_s0 = inlined_call_operand.vmem [shape: f32[4,8,40], index: 0, kind: input, shape index: {}]   ;;  %s5245_s1 = inlined_call_operand.vmem [shape: f32[4,8,8], index: 1, kind: input, shape index: {}]   ;;  %s5246_s2 = inlined_call_operand.vmem [shape: f32[4,8,8], index: 2, kind: input, shape index: {}]   ;;  %s5247_s3 = inlined_call_operand.vmem [shape: f32[4,8,8], index: 3, kind: input, shape index: {}]   ;;  %s5248_s4 = inlined_call_operand.vmem [shape: f32[40,260], index: 4, kind: input, shape index: {}]   ;;  %s5249_s5 = inlined_call_operand.vmem [shape: f32[256,18], index: 5, kind: input, shape index: {}]   ;;  %s5250_s6 = inlined_call_operand.vmem [shape: f32[16,260], index: 6, kind: input, shape index: {}]   ;;  %s5251_s7 = inlined_call_operand.vmem [shape: f32[256,18], index: 7, kind: input, shape index: {}]   ;;  %s5252_s8 = inlined_call_operand.vmem [shape: f32[32,24], index: 8, kind: input, shape index: {}]   ;;  %s5253_s9 = inlined_call_operand.vmem [shape: f32[1,24], index: 9, kind: input, shape index: {}]   ;;  %s5254_s10 = inlined_call_operand.hbm [shape: f32[4,8,24], index: 10, kind: output, shape index: {}]  }
   0x1   :  { %5257 = sst [smem:[#allocation5_spill]] %s5244_s0 }
   0x2   :  { %15 = vsyncpa [#allocation3], 0 }
   0x3   :  { %17 = vsyncpa [#allocation3 + $0x1], 0  ;;  %s4558_s13 = smov 0   ;;  %s4560_s14 = smov 0  }
   0x4   :  { %s4562_s15 = smov 0   ;;  %s4564_s16 = smov 0  }
   0x5 LB: > { %s4579_s17 = sadd.s32 4294967295, %s4489_s16   ;;  %s3775_s18 = sadd.s32 4294967294, %s4489_s16   ;;  %s4489_s16 = sphi %s4564_s16, %s5265_s16   ;;  %s4485_s15 = sphi %s4562_s15, %s5264_s15   ;;  %s4481_s14 = sphi %s4560_s14, %s5263_s14   ;;  %s4477_s13 = sphi %s4558_s13, %s5262_s13  }
   0x6   : > { %s4583_s19 = sadd.s32 1, %s4489_s16   ;;  %s260_s20 = sadd.s32 1, %s4485_s15 }
   0x7   : > { %s257_s21 = ssub.s32 %s4489_s16, %s4583_s19  ;;  %p270_p0 = scmp.ne.s32.totalorder %s4485_s15, %s4481_s14 }
   0x8   : > { %p258_p1 = scmp.eq.s32.totalorder %s257_s21, 0  ;;  %p271_p2 = scmp.eq.s32.totalorder %s4579_s17, 1 }
   0x9   : > { %p276_p3 = scmp.ne.s32.totalorder %s4481_s14, %s4477_s13  ;;  %p277_p4 = scmp.eq.s32.totalorder %s3775_s18, 1 }
   0xa   : > { %s4594_s22 = scalar_select %p258_p1, %s4485_s15, %s260_s20  }
   0xb   : > { %p4596_p5 = por %p271_p2, %p270_p0  ;;  %p4600_p6 = por %p277_p4, %p276_p3 }
   0xc   : > { %p3778_p7 = scmp.ge.s32.totalorder %s4489_s16, 1  ;;  %p349_p8 = scmp.lt.s32.totalorder %s4489_s16, 3 }
   0xe   : > { %p350_p9 = pnand %p3778_p7, %p349_p8 }
   0xf   : > { %v437_v0 = vld [vmem:[%s5248_s4 + $0x10] sm:$0xff] (!%p350_p9)  ;;  %v440_v1 = vld [vmem:[%s5248_s4 + $0x28] sm:$0xff] (!%p350_p9)  ;;  %v443_v2 = vld [vmem:[%s5248_s4 + $0x40] sm:$0xff] (!%p350_p9)  ;;  %s3780_s11 = sshll.u32 (!%p350_p9), %s4579_s17, 1  ;;  %vm482_vm0 = vcmask (!%p350_p9), 326656   ;;  %s5260_s0 = sld [smem:[#allocation5_spill]] (!%p350_p9) }
  0x10   : > { %353 = sbr.rel (%p350_p9) target bundleno = 6808 (0x1a98), region = 60  ;;  %v4192_v3 = vpack.c.bf16 (!%p350_p9), %v440_v1, %v437_v0  ;;  %v446_v4 = vld [vmem:[%s5248_s4 + $0x58] sm:$0xff] (!%p350_p9)  ;;  %p403_p10 = scmp.lt.s32.totalorder (!%p350_p9), %s3780_s11, 3  ;;  %v449_v6 = vld [vmem:[%s5248_s4 + $0x70] sm:$0xff] (!%p350_p9)  ;;  %v4491_v9 = vmov (!%p350_p9), 0   ;;  %v436_v10 = vld [vmem:[%s5248_s4 + $0x8] sm:$0xff] (!%p350_p9) }
  0x11   : > { %v4196_v5 = vpack.c.bf16 (!%p350_p9), %v446_v4, %v443_v2  ;;  %4332 = vset.pattern.permute.xlu1 (!%p350_p9), %v4491_v9  ;;  %v439_v11 = vld [vmem:[%s5248_s4 + $0x20] sm:$0xff] (!%p350_p9)  ;;  %v438_v14 = vld [vmem:[%s5248_s4 + $0x18] sm:$0xff] (!%p350_p9)  ;;  %v445_v16 = vld [vmem:[%s5248_s4 + $0x50] sm:$0xff] (!%p350_p9)  ;;  %v4492_v17 = vmov (!%p350_p9), 0.0   ;;  %vm4493_vm1 = vmmov (!%p350_p9), 0   ;;  %s4494_s27 = smov (!%p350_p9), 127  }
  0x12   : > { %4193 = vmatprep.subr.bf16.mxu1 (!%p350_p9), %v4192_v3  ;;  %v435_v12 = vld [vmem:[%s5248_s4] sm:$0xff] (!%p350_p9)  ;;  %v4184_v13 = vpack.c.bf16 (!%p350_p9), %v439_v11, %v436_v10  ;;  %v442_v15 = vld [vmem:[%s5248_s4 + $0x38] sm:$0xff] (!%p350_p9)  ;;  %553 = vmatprep.mubr.f32.mxu0 (!%p350_p9), %v4492_v17  ;;  %v441_v20 = vld [vmem:[%s5248_s4 + $0x30] sm:$0xff] (!%p350_p9)  ;;  %vm644_vm2 = vcmask (!%p350_p9), 7168   ;;  %v4495_v32 = vmov (!%p350_p9), 1.0   ;;  %v4496_v34 = vmov (!%p350_p9), 2  }
  0x13   : > { %4195 = vmatpush3.bf16.msra.mxu1 (!%p350_p9), %v4192_v3  ;;  %v4186_v18 = vpack.c.bf16 (!%p350_p9), %v438_v14, %v435_v12  ;;  %v4188_v19 = vpack.c.bf16 (!%p350_p9), %v445_v16, %v442_v15  ;;  %v444_v21 = vld [vmem:[%s5248_s4 + $0x48] sm:$0xff] (!%p350_p9)  ;;  %v447_v24 = vld [vmem:[%s5248_s4 + $0x60] sm:$0xff] (!%p350_p9)  ;;  %vm815_vm5 = vcmask (!%p350_p9), 64512   ;;  %s4499_s25 = smov (!%p350_p9), 111   ;;  %s4500_s12 = smov (!%p350_p9), [#allocation2]  }
  0x14   : > { %4197 = vmatprep.subr.bf16.mxu1 (!%p350_p9), %v4196_v5  ;;  %4185 = vmatprep.subr.bf16.mxu0 (!%p350_p9), %v4184_v13  ;;  %v4190_v22 = vpack.c.bf16 (!%p350_p9), %v444_v21, %v441_v20  ;;  %v448_v23 = vld [vmem:[%s5248_s4 + $0x68] sm:$0xff] (!%p350_p9) }
  0x15   : > { %4187 = vmatpush1.bf16.msra.mxu0 (!%p350_p9), %v4186_v18 }
  0x16   : > { %4189 = vmatprep.subr.bf16.mxu0 (!%p350_p9), %v4188_v19 }
  0x17   : > { %s5267_s11 = smov (!%p403_p10, %s3780_s11), 3  ;;  %4199 = vmatpush3.bf16.msra.mxu1 %v4196_v5 }
  0x18   : > { %s4619_s20 = sshll.u32 %s5267_s11, 3  ;;  %4018 = vmatprep.subr.mxu1 %v449_v6  ;;  %s5255_s11 = smov 125  }
  0x19   : > { %s406_s28 = scalar_lea.vmem %s5260_s0, %s4619_s20  ;;  %4191 = vmatpush1.bf16.msra.mxu0 %v4190_v22  ;;  %s412_s30 = scalar_lea.vmem %s5245_s1, %s4619_s20 }
  0x1a   : > { %v427_v7 = vld [vmem:[%s406_s28] sm:$0xff]  ;;  %v428_v8 = vld [vmem:[%s406_s28 + $0x8] sm:$0xff]  ;;  %497 = vmatprep.subr.mxu0 %v448_v23  ;;  %s418_s29 = scalar_lea.vmem %s5246_s2, %s4619_s20  ;;  %s424_s0 = scalar_lea.vmem %s5247_s3, %s4619_s20 }
  0x1b   : > { %4020 = vmatprep.mubr.msk.f32.mxu1 %vm482_vm0, %v427_v7  ;;  %4019 = vmatpush3.msra.mxu1 %v449_v6  ;;  %v4700_v37 = vld [vmem:[%s412_s30] sm:$0xff]  ;;  %v4703_v43 = vld [vmem:[%s412_s30 + $0x8] sm:$0xff]  ;;  %s5261_s20 = smov 125  }
  0x1c   : > { %4021 = vmatmul.mubr.msk.f32.vlgmr.msra.gmra.mrb[0].mxu1 %vm482_vm0, %v428_v8  ;;  %4023 = vmatprep.subr.mxu1 %v4492_v17  ;;  %vm811_vm4 = vcmp.gt.f32.partialorder %v4700_v37, 0.0  ;;  %vm812_vm7 = vcmp.gt.f32.partialorder %v4703_v43, 0.0 }
  0x1d   : > { %498 = vmatpush1.msra.mxu0 %v447_v24  ;;  %4025 = vmatprep.mubr.msk.f32.mxu1 %vm4493_vm1, %v4492_v17 }
  0x1e   : > { %3788 = vmatmul.mubr.msk.f32.vlgmr.msra.gmra.mrb[0].mxu0 %vm482_vm0, %v427_v7  ;;  %4028 = vmatprep.subr.mxu0 %v4492_v17 }
  0x1f   : > { %559 = vmatprep.mubr.f32.mxu0 %v4492_v17 }
  0x22   : > { %3789 = vmatmul.mubr.msk.f32.gmra.mrb[2].mxu0 %vm482_vm0, %v428_v8  ;;  %vm1765_vm0 = vcmask 130048  }
  0x23   : > { %4030 = vmatprep.mubr.msk.f32.mxu0 %vm4493_vm1, %v4492_v17 }
  0xef   : > { %v4671_v25 = vpop.f32.mrb[0].mxu1 }
  0xf0   : > { %v632_v26 = vpop.f32.mrb[1].mxu1 }
  0xf1   : > { %796 = vperm.xlu1 %4332, %v632_v26   ;;  %642 = vrot.lane.b32.xlu0 %v632_v26, %s4494_s27  ;;  %v555_v27 = vpop.f32.mrb[0].mxu0 }
  0xf2   : > { %v4677_v28 = vpop.f32.mrb[1].mxu0 }
  0xf5   : > { %800 = vperm.xlu1 %4332, %v4671_v25   ;;  %721 = vrot.lane.b32.xlu0 %v4671_v25, %s4494_s27  ;;  %v561_v29 = vpop.f32.mrb[2].mxu0 }
  0xf6   : > { %v4679_v30 = vpop.f32.mrb[3].mxu0 }
  0xf9   : > { %4333 = vset.pattern.permute.xlu1 %v4496_v34 }
 0x163   : > { %v643_v31 = vpop.permute.xlu0 %642 }
 0x164   : > { %4024 = vmatpush3.xpose.msk.msra.mxu1 %vm644_vm2, %v643_v31 }
 0x165   : > { %4033 = vmatprep.subr.mxu1 %v4492_v17 }
 0x167   : > { %4026 = vmatmul.mubr.msk.f32.vlgmr.msra.gmra.mrb[2].mxu1 %vm644_vm2, %v4495_v32  ;;  %v722_v33 = vpop.permute.xlu0 %721 }
 0x168   : > { %4029 = vmatpush3.xpose.msk.msra.mxu0 %vm644_vm2, %v722_v33  ;;  %4034 = vmatpush3.msra.mxu1 %v555_v27 }
 0x169   : > { %4038 = vmatprep.subr.mxu0 %v4492_v17  ;;  %4035 = vmatprep.mubr.msk.f32.mxu1 %vm4493_vm1, %v4492_v17 }
 0x16a   : > { %4043 = vmatprep.subr.mxu1 %v4492_v17 }
 0x16b   : > { %4031 = vmatmul.mubr.msk.f32.vlgmr.msra.gmra.mrb[4].mxu0 %vm644_vm2, %v4495_v32 }
 0x16c   : > { %4039 = vmatpush3.msra.mxu0 %v561_v29  ;;  %4040 = vmatprep.mubr.msk.f32.mxu0 %vm4493_vm1, %v4492_v17 }
 0x16d   : > { %4048 = vmatprep.subr.mxu0 %v4492_v17 }
 0x170   : > { %v797_v35 = vpop.permute.xlu1 %796 }
 0x174   : > { %v801_v41 = vpop.permute.xlu1 %800 }
 0x23a   : > { %v716_v36 = vpop.f32.mrb[2].mxu1 }
 0x23b   : > { %v803_v38 = vadd.f32 %v797_v35, %v716_v36  ;;  %v4027_v39 = vpop.f32.mrb[3].mxu1 }
 0x23d   : > { %v807_v40 = vmul.f32 0.2, %v803_v38  ;;  %vm805_vm3 = vcmp.gt.f32.partialorder %v803_v38, 0.0 }
 0x23e   : > { %v791_v42 = vpop.f32.mrb[4].mxu0 }
 0x23f   : > { %v804_v44 = vadd.f32 %v801_v41, %v791_v42  ;;  %v4032_v45 = vpop.f32.mrb[5].mxu0  ;;  %v809_v46 = vsel %vm805_vm3, %v803_v38, %v807_v40  ;;  %v466_v42 = vld [vmem:[%s5249_s5 + $0x80] sm:$0xff] }
 0x240   : > { %v813_v47 = vsel %vm811_vm4, %v809_v46, -9e+15 }
 0x241   : > { %v808_v48 = vmul.f32 0.2, %v804_v44  ;;  %v816_v49 = vsel %vm815_vm5, %v813_v47, -inf  ;;  %vm806_vm6 = vcmp.gt.f32.partialorder %v804_v44, 0.0 }
 0x242   : > { %817 = vmax.xlane.f32.xlu0 %v816_v49  ;;  %v451_v49 = vld [vmem:[%s5249_s5 + $0x8] sm:$0xff] }
 0x243   : > { %v810_v50 = vsel %vm806_vm6, %v804_v44, %v808_v48  ;;  %v467_v44 = vld [vmem:[%s5249_s5 + $0x88] sm:$0xff]  ;;  %v450_v48 = vld [vmem:[%s5249_s5] sm:$0xff] }
 0x244   : > { %v814_v51 = vsel %vm812_vm7, %v810_v50, -9e+15  ;;  %v4200_v45 = vpack.c.bf16 %v467_v44, %v466_v42  ;;  %v468_v50 = vld [vmem:[%s5249_s5 + $0x90] sm:$0xff] }
 0x245   : > { %v819_v52 = vsel %vm815_vm5, %v814_v51, -inf }
 0x246   : > { %820 = vmax.xlane.f32.xlu1 %v819_v52 }
 0x257   : > { %996 = vrot.lane.b32.xlu1 %v632_v26, %s5255_s11 }
 0x25b   : > { %1145 = vperm.xlu1 %4333, %v632_v26  }
 0x25f   : > { %1149 = vperm.xlu1 %4333, %v4671_v25  }
 0x2cf   : > { %v818_v53 = vpop.xlane.xlu0 %817 }
 0x2d0   : > { %v822_v54 = vsub.f32 %v813_v47, %v818_v53  ;;  %v4202_v53 = vpack.c.bf16 %v451_v49, %v450_v48 }
 0x2d2   : > { %v824_v55 = vmul.f32 1.442695, %v822_v54 }
 0x2d3   : > { %v821_v56 = vpop.xlane.xlu1 %820 }
 0x2d4   : > { %4339 = vpow2.f32 %v824_v55  ;;  %v823_v57 = vsub.f32 %v814_v51, %v821_v56  ;;  %v469_v51 = vld [vmem:[%s5249_s5 + $0x98] sm:$0xff]  ;;  %v452_v56 = vld [vmem:[%s5249_s5 + $0x10] sm:$0xff] }
 0x2d5   : > { %v4204_v55 = vpack.c.bf16 %v469_v51, %v468_v50 }
 0x2d6   : > { %v826_v58 = vmul.f32 1.442695, %v823_v57  ;;  %v453_v57 = vld [vmem:[%s5249_s5 + $0x18] sm:$0xff] }
 0x2d7   : > { %v997_v3 = vpop.permute.xlu1 %996 }
 0x2d8   : > { %4341 = vpow2.f32 %v826_v58  ;;  %v470_v58 = vld [vmem:[%s5249_s5 + $0xa0] sm:$0xff] }
 0x2db   : > { %v1146_v10 = vpop.permute.xlu1 %1145 }
 0x2de   : > { %v4340_v59 = vpop.eup %4339 }
 0x2df   : > { %v828_v60 = vsel %vm815_vm5, %v4340_v59, 0.0  ;;  %v1150_v18 = vpop.permute.xlu1 %1149 }
 0x2e0   : > { %829 = vadd.xlane.f32.xlu0 %v828_v60 }
 0x2e2   : > { %v4342_v61 = vpop.eup %4341 }
 0x2e3   : > { %v831_v62 = vsel %vm815_vm5, %v4342_v61, 0.0 }
 0x2e4   : > { %832 = vadd.xlane.f32.xlu0 %v831_v62 }
 0x2fa   : > { %1070 = vrot.lane.b32.xlu0 %v4671_v25, %s5255_s11  ;;  %s399_s11 = sand.u32 1, %s4481_s14  }
 0x2fb   : > { %s3779_s18 = sshll.u32 %s399_s11, 4  ;;  %s5203_s30 = scalar_lea.sflag [#allocation3], %s399_s11 }
 0x36d   : > { %v830_v63 = vpop.xlane.xlu0 %829 }
 0x36e   : > { %4343 = vrcp.f32 %v830_v63 }
 0x371   : > { %v833_v0 = vpop.xlane.xlu0 %832 }
 0x372   : > { %4345 = vrcp.f32 %v833_v0  ;;  %v454_v0 = vld [vmem:[%s5249_s5 + $0x20] sm:$0xff] }
 0x375   : > { %v1071_v6 = vpop.permute.xlu0 %1070 }
 0x378   : > { %v4344_v1 = vpop.eup %4343 }
 0x379   : > { %v835_v2 = vmul.f32 %v4344_v1, %v4340_v59  ;;  %v471_v59 = vld [vmem:[%s5249_s5 + $0xa8] sm:$0xff] }
 0x37a   : > { %v4208_v63 = vpack.c.bf16 %v471_v59, %v470_v58  ;;  %v455_v1 = vld [vmem:[%s5249_s5 + $0x28] sm:$0xff] }
 0x37b   : > { %4036 = vmatmul.mubr.msk.f32.vlgmr.msra.gmra.mrb[4].mxu1 %vm815_vm5, %v835_v2  ;;  %v4210_v2 = vpack.c.bf16 %v455_v1, %v454_v0  ;;  %v4498_v1 = vmov 16  }
 0x37c   : > { %v4346_v4 = vpop.eup %4345  ;;  %4044 = vmatpush3.xpose.msk.msra.mxu1 %vm644_vm2, %v997_v3  ;;  %4045 = vmatprep.mubr.msk.f32.mxu1 %vm4493_vm1, %v4492_v17  ;;  %v472_v3 = vld [vmem:[%s5249_s5 + $0xb0] sm:$0xff] }
 0x37d   : > { %v837_v5 = vmul.f32 %v4346_v4, %v4342_v61  ;;  %4053 = vmatprep.subr.mxu1 %v4492_v17  ;;  %v4206_v61 = vpack.c.bf16 %v453_v57, %v452_v56  ;;  %v473_v4 = vld [vmem:[%s5249_s5 + $0xb8] sm:$0xff]  ;;  %4334 = vset.pattern.permute.xlu1 %v4498_v1 }
 0x37f   : > { %4041 = vmatmul.mubr.msk.f32.vlgmr.msra.gmra.mrb[6].mxu0 %vm815_vm5, %v837_v5  ;;  %4046 = vmatmul.mubr.msk.f32.vlgmr.msra.gmra.mrb[6].mxu1 %vm644_vm2, %v4495_v32  ;;  %v4212_v5 = vpack.c.bf16 %v473_v4, %v472_v3 }
 0x380   : > { %4049 = vmatpush3.xpose.msk.msra.mxu0 %vm644_vm2, %v1071_v6  ;;  %4054 = vmatpush3.msra.mxu1 %v4677_v28  ;;  %v456_v6 = vld [vmem:[%s5249_s5 + $0x30] sm:$0xff] }
 0x381   : > { %4050 = vmatprep.mubr.msk.f32.mxu0 %vm4493_vm1, %v4492_v17  ;;  %4058 = vmatprep.subr.mxu0 %v4492_v17 }
 0x382   : > { %4055 = vmatprep.mubr.msk.f32.mxu1 %vm4493_vm1, %v4492_v17  ;;  %4201 = vmatprep.subr.bf16.mxu1 %v4200_v45 }
 0x383   : > { %4051 = vmatmul.mubr.msk.f32.vlgmr.msra.gmra.mrb[8].mxu0 %vm644_vm2, %v4495_v32 }
 0x384   : > { %4059 = vmatpush3.msra.mxu0 %v4679_v30  ;;  %4060 = vmatprep.mubr.msk.f32.mxu0 %vm4493_vm1, %v4492_v17 }
 0x385   : > { %4063 = vmatprep.subr.mxu0 %v4492_v17 }
 0x44e   : > { %v4739_v7 = vpop.f32.mrb[4].mxu1 }
 0x44f   : > { %v4037_v8 = vpop.f32.mrb[5].mxu1  ;;  %vm984_vm11 = vcmp.gt.f32.partialorder %v4739_v7, 0.0 }
 0x450   : > { %v457_v8 = vld [vmem:[%s5249_s5 + $0x38] sm:$0xff] }
 0x452   : > { %v4741_v11 = vpop.f32.mrb[6].mxu0  ;;  %v1066_v12 = vpop.f32.mrb[6].mxu1 }
 0x453   : > { %v1152_v13 = vadd.f32 %v1146_v10, %v1066_v12  ;;  %v4042_v14 = vpop.f32.mrb[7].mxu0  ;;  %v4047_v15 = vpop.f32.mrb[7].mxu1  ;;  %v4214_v10 = vpack.c.bf16 %v457_v8, %v456_v6  ;;  %v474_v12 = vld [vmem:[%s5249_s5 + $0xc0] sm:$0xff]  ;;  %v987_v42 = vmin.f32 %v4741_v11, 0.0  ;;  %vm985_vm13 = vcmp.gt.f32.partialorder %v4741_v11, 0.0 }
 0x454   : > { %v458_v15 = vld [vmem:[%s5249_s5 + $0x40] sm:$0xff] }
 0x455   : > { %v1156_v16 = vmul.f32 0.2, %v1152_v13  ;;  %vm1154_vm8 = vcmp.gt.f32.partialorder %v1152_v13, 0.0 }
 0x456   : > { %v1140_v19 = vpop.f32.mrb[8].mxu0 }
 0x457   : > { %v1153_v20 = vadd.f32 %v1150_v18, %v1140_v19  ;;  %v4052_v21 = vpop.f32.mrb[9].mxu0  ;;  %v1158_v22 = vsel %vm1154_vm8, %v1152_v13, %v1156_v16  ;;  %v475_v13 = vld [vmem:[%s5249_s5 + $0xc8] sm:$0xff]  ;;  %v476_v19 = vld [vmem:[%s5249_s5 + $0xd0] sm:$0xff] }
 0x458   : > { %v1160_v23 = vsel %vm811_vm4, %v1158_v22, -9e+15  ;;  %v4216_v14 = vpack.c.bf16 %v475_v13, %v474_v12  ;;  %v459_v16 = vld [vmem:[%s5249_s5 + $0x48] sm:$0xff]  ;;  %v460_v22 = vld [vmem:[%s5249_s5 + $0x50] sm:$0xff] }
 0x459   : > { %v1157_v24 = vmul.f32 0.2, %v1153_v20  ;;  %v1162_v25 = vsel %vm815_vm5, %v1160_v23, -inf  ;;  %vm1155_vm9 = vcmp.gt.f32.partialorder %v1153_v20, 0.0  ;;  %v4218_v18 = vpack.c.bf16 %v459_v16, %v458_v15 }
 0x45a   : > { %1163 = vmax.xlane.f32.xlu0 %v1162_v25  ;;  %v478_v25 = vld [vmem:[%s5249_s5 + $0xe0] sm:$0xff] }
 0x45b   : > { %v1159_v26 = vsel %vm1155_vm9, %v1153_v20, %v1157_v24  ;;  %v477_v20 = vld [vmem:[%s5249_s5 + $0xd8] sm:$0xff] }
 0x45c   : > { %v1161_v27 = vsel %vm812_vm7, %v1159_v26, -9e+15  ;;  %v4220_v21 = vpack.c.bf16 %v477_v20, %v476_v19  ;;  %v479_v26 = vld [vmem:[%s5249_s5 + $0xe8] sm:$0xff] }
 0x45d   : > { %v1165_v28 = vsel %vm815_vm5, %v1161_v27, -inf }
 0x45e   : > { %1166 = vmax.xlane.f32.xlu1 %v1165_v28  ;;  %v4224_v28 = vpack.c.bf16 %v479_v26, %v478_v25 }
 0x4e7   : > { %v1164_v29 = vpop.xlane.xlu0 %1163 }
 0x4e8   : > { %v1168_v30 = vsub.f32 %v1160_v23, %v1164_v29  ;;  %v461_v23 = vld [vmem:[%s5249_s5 + $0x58] sm:$0xff]  ;;  %v463_v29 = vld [vmem:[%s5249_s5 + $0x68] sm:$0xff] }
 0x4e9   : > { %v4222_v24 = vpack.c.bf16 %v461_v23, %v460_v22 }
 0x4ea   : > { %v1170_v31 = vmul.f32 1.442695, %v1168_v30  ;;  %v480_v30 = vld [vmem:[%s5249_s5 + $0xf0] sm:$0xff] }
 0x4eb   : > { %v1167_v33 = vpop.xlane.xlu1 %1166 }
 0x4ec   : > { %4347 = vpow2.f32 %v1170_v31  ;;  %v1169_v35 = vsub.f32 %v1161_v27, %v1167_v33  ;;  %v462_v27 = vld [vmem:[%s5249_s5 + $0x60] sm:$0xff]  ;;  %v481_v31 = vld [vmem:[%s5249_s5 + $0xf8] sm:$0xff] }
 0x4ed   : > { %v4226_v33 = vpack.c.bf16 %v463_v29, %v462_v27 }
 0x4ee   : > { %v1172_v36 = vmul.f32 1.442695, %v1169_v35  ;;  %v4228_v35 = vpack.c.bf16 %v481_v31, %v480_v30 }
 0x4f0   : > { %4349 = vpow2.f32 %v1172_v36  ;;  %v464_v36 = vld [vmem:[%s5249_s5 + $0x70] sm:$0xff] }
 0x4f6   : > { %v4348_v38 = vpop.eup %4347 }
 0x4f7   : > { %v1174_v39 = vsel %vm815_vm5, %v4348_v38, 0.0 }
 0x4f8   : > { %1175 = vadd.xlane.f32.xlu0 %v1174_v39 }
 0x4fa   : > { %v4350_v40 = vpop.eup %4349 }
 0x4fb   : > { %v1177_v41 = vsel %vm815_vm5, %v4350_v40, 0.0 }
 0x4fc   : > { %1178 = vadd.xlane.f32.xlu0 %v1177_v41 }
 0x585   : > { %v1176_v46 = vpop.xlane.xlu0 %1175 }
 0x586   : > { %4351 = vrcp.f32 %v1176_v46 }
 0x589   : > { %v1179_v47 = vpop.xlane.xlu0 %1178 }
 0x58a   : > { %4353 = vrcp.f32 %v1179_v47  ;;  %v990_v47 = vmul.f32 1.442695, %v987_v42 }
 0x590   : > { %v4352_v52 = vpop.eup %4351 }
 0x591   : > { %v1181_v54 = vmul.f32 %v4352_v52, %v4348_v38  ;;  %v465_v38 = vld [vmem:[%s5249_s5 + $0x78] sm:$0xff] }
 0x592   : > { %v4230_v39 = vpack.c.bf16 %v465_v38, %v464_v36 }
 0x593   : > { %4056 = vmatmul.mubr.msk.f32.vlgmr.msra.gmra.mrb[8].mxu1 %vm815_vm5, %v1181_v54 }
 0x594   : > { %v4354_v60 = vpop.eup %4353  ;;  %4203 = vmatpush3.bf16.msra.mxu1 %v4202_v53 }
 0x595   : > { %v1183_v62 = vmul.f32 %v4354_v60, %v4350_v40  ;;  %4205 = vmatprep.subr.bf16.mxu1 %v4204_v55  ;;  %v986_v40 = vmin.f32 %v4739_v7, 0.0 }
 0x597   : > { %4061 = vmatmul.mubr.msk.f32.vlgmr.msra.gmra.mrb[10].mxu0 %vm815_vm5, %v1183_v62  ;;  %v988_v41 = vmul.f32 1.442695, %v986_v40 }
 0x598   : > { %4207 = vmatpush3.bf16.msra.mxu1 %v4206_v61  ;;  %4065 = vmatprep.mubr.msk.f32.mxu0 %vm4493_vm1, %v4492_v17 }
 0x599   : > { %4209 = vmatprep.subr.bf16.mxu1 %v4208_v63  ;;  %4355 = vpow2.f32 %v988_v41 }
 0x59c   : > { %4211 = vmatpush3.bf16.msra.mxu1 %v4210_v2 }
 0x59d   : > { %4213 = vmatprep.subr.bf16.mxu1 %v4212_v5 }
 0x5a0   : > { %4215 = vmatpush3.bf16.msra.mxu1 %v4214_v10 }
 0x5a1   : > { %4217 = vmatprep.subr.bf16.mxu1 %v4216_v14 }
 0x5a3   : > { %v4356_v53 = vpop.eup %4355 }
 0x5a4   : > { %4219 = vmatpush3.bf16.msra.mxu1 %v4218_v18  ;;  %v3798_v55 = vadd.f32 -1.0, %v4356_v53 }
 0x5a5   : > { %4221 = vmatprep.subr.bf16.mxu1 %v4220_v21 }
 0x5a6   : > { %v994_v60 = vsel %vm984_vm11, %v4739_v7, %v3798_v55 }
 0x5a8   : > { %4223 = vmatpush3.bf16.msra.mxu1 %v4222_v24 }
 0x5a9   : > { %4225 = vmatprep.subr.bf16.mxu1 %v4224_v28 }
 0x5ac   : > { %4227 = vmatpush3.bf16.msra.mxu1 %v4226_v33 }
 0x5ad   : > { %4229 = vmatprep.subr.bf16.mxu1 %v4228_v35 }
 0x5b0   : > { %4231 = vmatpush3.bf16.msra.mxu1 %v4230_v39 }
 0x5b1   : > { %4100 = vmatprep.subr.mxu1 %v4492_v17 }
 0x666   : > { %v1253_v44 = vpop.f32.mrb[8].mxu1 }
 0x667   : > { %v1332_v45 = vmin.f32 %v1253_v44, 0.0  ;;  %v4057_v46 = vpop.f32.mrb[9].mxu1  ;;  %vm1330_vm10 = vcmp.gt.f32.partialorder %v1253_v44, 0.0 }
 0x669   : > { %v1334_v48 = vmul.f32 1.442695, %v1332_v45 }
 0x66a   : > { %v1326_v49 = vpop.f32.mrb[10].mxu0 }
 0x66b   : > { %4357 = vpow2.f32 %v1334_v48  ;;  %v1333_v50 = vmin.f32 %v1326_v49, 0.0  ;;  %v4062_v51 = vpop.f32.mrb[11].mxu0  ;;  %vm1331_vm12 = vcmp.gt.f32.partialorder %v1326_v49, 0.0 }
 0x66c   : > { %4359 = vpow2.f32 %v990_v47 }
 0x66d   : > { %v1336_v52 = vmul.f32 1.442695, %v1333_v50 }
 0x66f   : > { %4361 = vpow2.f32 %v1336_v52 }
 0x675   : > { %v4358_v54 = vpop.eup %4357 }
 0x676   : > { %v4360_v56 = vpop.eup %4359  ;;  %v3806_v57 = vadd.f32 -1.0, %v4358_v54 }
 0x677   : > { %v3799_v61 = vadd.f32 -1.0, %v4360_v56 }
 0x678   : > { %v1340_v58 = vsel %vm1330_vm10, %v1253_v44, %v3806_v57 }
 0x679   : > { %v4362_v59 = vpop.eup %4361  ;;  %1406 = vmatprep.mubr.f32.mxu1 %v1340_v58  ;;  %v995_v0 = vsel %vm985_vm13, %v4741_v11, %v3799_v61 }
 0x67a   : > { %1407 = vmatmul.mubr.f32.vlgmr.msra.gmra.mrb[10].mxu1 %v994_v60  ;;  %v3807_v62 = vadd.f32 -1.0, %v4362_v59 }
 0x67c   : > { %v1341_v63 = vsel %vm1331_vm12, %v1326_v49, %v3807_v62 }
 0x67d   : > { %1411 = vmatprep.mubr.f32.mxu1 %v1341_v63 }
 0x67e   : > { %1412 = vmatmul.mubr.f32.gmra.mrb[12].mxu1 %v995_v0 }
 0x67f   : > { %4102 = vmatprep.mubr.msk.f32.mxu1 %vm4493_vm1, %v4492_v17 }
 0x74d   : > { %v3914_v2 = vpop.f32.mrb[10].mxu1 }
 0x74e   : > { %v3915_v3 = vpop.f32.mrb[11].mxu1 }
 0x74f   : > { %v3916_v7 = vadd.f32 %v3915_v3, %v3914_v2 }
 0x751   : > { %1418 = vrot.lane.b32.xlu1 %v3916_v7, %s4499_s25  ;;  %v3917_v4 = vpop.f32.mrb[12].mxu1 }
 0x752   : > { %v3918_v5 = vpop.f32.mrb[13].mxu1 }
 0x753   : > { %v3919_v6 = vadd.f32 %v3918_v5, %v3917_v4 }
 0x755   : > { %1568 = vperm.xlu1 %4334, %v3916_v7   ;;  %1493 = vrot.lane.b32.xlu0 %v3919_v6, %s4499_s25 }
 0x759   : > { %1572 = vperm.xlu1 %4334, %v3919_v6  }
 0x75d   : > { %4335 = vset.pattern.permute.xlu1 %v4491_v9 }
 0x7c3   : > { %v1419_v11 = vpop.permute.xlu1 %1418 }
 0x7c4   : > { %4064 = vmatpush3.xpose.msk.msra.mxu0 %vm644_vm2, %v1419_v11 }
 0x7c5   : > { %4068 = vmatprep.subr.mxu0 %v4492_v17 }
 0x7c7   : > { %4066 = vmatmul.mubr.msk.f32.vlgmr.msra.gmra.mrb[12].mxu0 %vm644_vm2, %v4495_v32  ;;  %v1494_v8 = vpop.permute.xlu0 %1493 }
 0x7c8   : > { %4069 = vmatpush3.xpose.msk.msra.mxu0 %vm644_vm2, %v1494_v8  ;;  %4070 = vmatprep.mubr.msk.f32.mxu0 %vm4493_vm1, %v4492_v17 }
 0x7c9   : > { %4073 = vmatprep.subr.mxu0 %v4492_v17 }
 0x7cb   : > { %4071 = vmatmul.mubr.msk.f32.vlgmr.msra.gmra.mrb[14].mxu0 %vm644_vm2, %v4495_v32 }
 0x7cc   : > { %4074 = vmatpush3.msra.mxu0 %v3916_v7  ;;  %4075 = vmatprep.mubr.msk.f32.mxu0 %vm4493_vm1, %v4492_v17 }
 0x7cd   : > { %4078 = vmatprep.subr.mxu0 %v4492_v17 }
 0x7d4   : > { %v1569_v9 = vpop.permute.xlu1 %1568 }
 0x7d8   : > { %v1573_v15 = vpop.permute.xlu1 %1572 }
 0x89a   : > { %v1488_v10 = vpop.f32.mrb[12].mxu0 }
 0x89b   : > { %v1575_v12 = vadd.f32 %v1569_v9, %v1488_v10  ;;  %v4067_v13 = vpop.f32.mrb[13].mxu0 }
 0x89c   : > { %v4902_v13 = vld [vmem:[%s418_s29] sm:$0xff] }
 0x89d   : > { %v1579_v14 = vmul.f32 0.2, %v1575_v12  ;;  %vm1577_vm14 = vcmp.gt.f32.partialorder %v1575_v12, 0.0 }
 0x89e   : > { %v1563_v16 = vpop.f32.mrb[14].mxu0 }
 0x89f   : > { %v1576_v18 = vadd.f32 %v1573_v15, %v1563_v16  ;;  %v4072_v19 = vpop.f32.mrb[15].mxu0  ;;  %v1581_v20 = vsel %vm1577_vm14, %v1575_v12, %v1579_v14  ;;  %v1937_v14 = vld [vmem:[%s5250_s6 + $0x8] sm:$0xff]  ;;  %v1940_v15 = vld [vmem:[%s5250_s6 + $0x20] sm:$0xff] }
 0x8a0   : > { %v1583_v21 = vsel %vm811_vm4, %v1581_v20, -9e+15  ;;  %v1939_v19 = vld [vmem:[%s5250_s6 + $0x18] sm:$0xff] }
 0x8a1   : > { %v1580_v22 = vmul.f32 0.2, %v1576_v18  ;;  %v1585_v23 = vsel %vm815_vm5, %v1583_v21, -inf  ;;  %vm1578_vm15 = vcmp.gt.f32.partialorder %v1576_v18, 0.0 }
 0x8a2   : > { %1586 = vmax.xlane.f32.xlu0 %v1585_v23  ;;  %v4924_v23 = vld [vmem:[%s418_s29 + $0x8] sm:$0xff] }
 0x8a3   : > { %v1582_v24 = vsel %vm1578_vm15, %v1576_v18, %v1580_v22  ;;  %v1936_v18 = vld [vmem:[%s5250_s6] sm:$0xff] }
 0x8a4   : > { %v1584_v25 = vsel %vm812_vm7, %v1582_v24, -9e+15  ;;  %v4234_v24 = vpack.c.bf16 %v1939_v19, %v1936_v18 }
 0x8a5   : > { %v1588_v26 = vsel %vm815_vm5, %v1584_v25, -inf }
 0x8a6   : > { %1589 = vmax.xlane.f32.xlu1 %v1588_v26  ;;  %v1941_v26 = vld [vmem:[%s5250_s6 + $0x28] sm:$0xff] }
 0x92f   : > { %v1587_v27 = vpop.xlane.xlu0 %1586 }
 0x930   : > { %v1591_v28 = vsub.f32 %v1583_v21, %v1587_v27  ;;  %v4232_v21 = vpack.c.bf16 %v1940_v15, %v1937_v14 }
 0x932   : > { %v1593_v29 = vmul.f32 1.442695, %v1591_v28 }
 0x933   : > { %v1590_v30 = vpop.xlane.xlu1 %1589 }
 0x934   : > { %4363 = vpow2.f32 %v1593_v29  ;;  %v1592_v31 = vsub.f32 %v1584_v25, %v1590_v30  ;;  %v1938_v25 = vld [vmem:[%s5250_s6 + $0x10] sm:$0xff] }
 0x935   : > { %v4236_v27 = vpack.c.bf16 %v1941_v26, %v1938_v25 }
 0x936   : > { %v1595_v37 = vmul.f32 1.442695, %v1592_v31 }
 0x938   : > { %4365 = vpow2.f32 %v1595_v37 }
 0x93e   : > { %v4364_v33 = vpop.eup %4363 }
 0x93f   : > { %v1597_v35 = vsel %vm815_vm5, %v4364_v33, 0.0 }
 0x940   : > { %1598 = vadd.xlane.f32.xlu0 %v1597_v35 }
 0x942   : > { %v4366_v36 = vpop.eup %4365 }
 0x943   : > { %v1600_v38 = vsel %vm815_vm5, %v4366_v36, 0.0 }
 0x944   : > { %1601 = vadd.xlane.f32.xlu0 %v1600_v38 }
 0x9cd   : > { %v1599_v43 = vpop.xlane.xlu0 %1598 }
 0x9ce   : > { %4367 = vrcp.f32 %v1599_v43 }
 0x9d1   : > { %v1602_v39 = vpop.xlane.xlu0 %1601 }
 0x9d2   : > { %4369 = vrcp.f32 %v1602_v39 }
 0x9d8   : > { %v4368_v40 = vpop.eup %4367 }
 0x9d9   : > { %v1604_v41 = vmul.f32 %v4368_v40, %v4364_v33 }
 0x9db   : > { %4076 = vmatmul.mubr.msk.f32.vlgmr.msra.gmra.mrb[16].mxu0 %vm815_vm5, %v1604_v41 }
 0x9dc   : > { %v4370_v42 = vpop.eup %4369  ;;  %4079 = vmatpush3.msra.mxu0 %v3919_v6  ;;  %4080 = vmatprep.mubr.msk.f32.mxu0 %vm4493_vm1, %v4492_v17 }
 0x9dd   : > { %v1606_v44 = vmul.f32 %v4370_v42, %v4366_v36  ;;  %4083 = vmatprep.subr.mxu0 %v4492_v17 }
 0x9df   : > { %4081 = vmatmul.mubr.msk.f32.vlgmr.msra.gmra.mrb[18].mxu0 %vm815_vm5, %v1606_v44  ;;  %v4973_v44 = vld [vmem:[%s424_s0 + $0x8] sm:$0xff] }
 0x9e0   : > { %4085 = vmatprep.mubr.msk.f32.mxu0 %vm4493_vm1, %v4492_v17  ;;  %vm2299_vm7 = vcmp.gt.f32.partialorder %v4973_v44, 0.0 }
 0xaae   : > { %v1676_v45 = vpop.f32.mrb[16].mxu0 }
 0xaaf   : > { %v1755_v46 = vmin.f32 %v1676_v45, 0.0  ;;  %v4077_v47 = vpop.f32.mrb[17].mxu0  ;;  %vm1753_vm3 = vcmp.gt.f32.partialorder %v1676_v45, 0.0 }
 0xab0   : > { %v4975_v47 = vld [vmem:[%s424_s0] sm:$0xff] }
 0xab1   : > { %v1757_v48 = vmul.f32 1.442695, %v1755_v46  ;;  %vm2298_vm9 = vcmp.gt.f32.partialorder %v4975_v47, 0.0 }
 0xab2   : > { %v1749_v49 = vpop.f32.mrb[18].mxu0 }
 0xab3   : > { %4371 = vpow2.f32 %v1757_v48  ;;  %v1756_v50 = vmin.f32 %v1749_v49, 0.0  ;;  %v4082_v51 = vpop.f32.mrb[19].mxu0  ;;  %vm1754_vm4 = vcmp.gt.f32.partialorder %v1749_v49, 0.0 }
 0xab5   : > { %v1759_v52 = vmul.f32 1.442695, %v1756_v50 }
 0xab7   : > { %4373 = vpow2.f32 %v1759_v52 }
 0xabd   : > { %v4372_v53 = vpop.eup %4371 }
 0xabe   : > { %v3814_v54 = vadd.f32 -1.0, %v4372_v53 }
 0xac0   : > { %v1763_v55 = vsel %vm1753_vm3, %v1676_v45, %v3814_v54 }
 0xac1   : > { %v4374_v56 = vpop.eup %4373  ;;  %v1766_v57 = vsel %vm1765_vm0, %v1763_v55, -inf }
 0xac2   : > { %1767 = vmax.xlane.f32.xlu1 %v1766_v57  ;;  %v3815_v58 = vadd.f32 -1.0, %v4374_v56 }
 0xac4   : > { %v1764_v59 = vsel %vm1754_vm4, %v1749_v49, %v3815_v58 }
 0xac5   : > { %v1769_v60 = vsel %vm1765_vm0, %v1764_v59, -inf }
 0xac6   : > { %1770 = vmax.xlane.f32.xlu0 %v1769_v60 }
 0xb4f   : > { %v1768_v61 = vpop.xlane.xlu1 %1767 }
 0xb50   : > { %v1772_v62 = vsub.f32 %v1763_v55, %v1768_v61 }
 0xb52   : > { %v1774_v63 = vmul.f32 1.442695, %v1772_v62 }
 0xb53   : > { %v1771_v0 = vpop.xlane.xlu0 %1770 }
 0xb54   : > { %4375 = vpow2.f32 %v1774_v63  ;;  %v1773_v2 = vsub.f32 %v1764_v59, %v1771_v0 }
 0xb56   : > { %v1776_v3 = vmul.f32 1.442695, %v1773_v2 }
 0xb58   : > { %4377 = vpow2.f32 %v1776_v3 }
 0xb5e   : > { %v4376_v7 = vpop.eup %4375 }
 0xb5f   : > { %v1778_v4 = vsel %vm1765_vm0, %v4376_v7, 0.0 }
 0xb60   : > { %1779 = vadd.xlane.f32.xlu1 %v1778_v4 }
 0xb62   : > { %v4378_v5 = vpop.eup %4377 }
 0xb63   : > { %v1781_v6 = vsel %vm1765_vm0, %v4378_v5, 0.0 }
 0xb64   : > { %1782 = vadd.xlane.f32.xlu0 %v1781_v6 }
 0xbed   : > { %v1780_v11 = vpop.xlane.xlu1 %1779 }
 0xbee   : > { %4379 = vlog2.f32 %v1780_v11 }
 0xbf1   : > { %v1783_v8 = vpop.xlane.xlu0 %1782 }
 0xbf2   : > { %4381 = vlog2.f32 %v1783_v8 }
 0xbf8   : > { %v4380_v9 = vpop.eup %4379 }
 0xbf9   : > { %v1785_v10 = vmul.f32 0.6931472, %v4380_v9 }
 0xbfb   : > { %v4900_v12 = vsub.f32 %v1772_v62, %v1785_v10 }
 0xbfc   : > { %v4382_v16 = vpop.eup %4381 }
 0xbfd   : > { %v1787_v20 = vmul.f32 0.6931472, %v4382_v16  ;;  %4084 = vmatpush3.msra.mxu0 %v4900_v12 }
 0xbfe   : > { %4086 = vmatmul.mubr.msk.f32.vlgmr.msra.gmra.mrb[20].mxu0 %vm815_vm5, %v4902_v13  ;;  %4088 = vmatprep.subr.mxu0 %v4492_v17 }
 0xbff   : > { %v4920_v22 = vsub.f32 %v1773_v2, %v1787_v20  ;;  %4090 = vmatprep.mubr.msk.f32.mxu0 %vm4493_vm1, %v4492_v17 }
 0xc01   : > { %4089 = vmatpush3.msra.mxu0 %v4920_v22 }
 0xc02   : > { %4091 = vmatmul.mubr.msk.f32.vlgmr.msra.gmra.mrb[22].mxu0 %vm815_vm5, %v4924_v23  ;;  %4233 = vmatprep.subr.bf16.mxu0 %v4232_v21 }
 0xc03   : > { %4235 = vmatpush1.bf16.msra.mxu0 %v4234_v24  ;;  %2044 = vmatprep.mubr.f32.mxu0 %v4492_v17 }
 0xc04   : > { %4237 = vmatprep.subr.bf16.mxu0 %v4236_v27 }
 0xcd1   : > { %v1859_v28 = vpop.f32.mrb[20].mxu0 }
 0xcd2   : > { %v4087_v29 = vpop.f32.mrb[21].mxu0  ;;  %3818 = vmatmul.mubr.msk.f32.vlgmr.msra.gmra.mrb[24].mxu0 %vm1765_vm0, %v1859_v28 }
 0xcd3   : > { %2050 = vmatprep.mubr.f32.mxu0 %v4492_v17  ;;  %4239 = vmatpush3.bf16.msra.mxu0 %v4236_v27 }
 0xcd4   : > { %4105 = vmatprep.subr.mxu0 %v4492_v17 }
 0xcd5   : > { %v1932_v30 = vpop.f32.mrb[22].mxu0 }
 0xcd6   : > { %v4092_v31 = vpop.f32.mrb[23].mxu0  ;;  %3819 = vmatmul.mubr.msk.f32.gmra.mrb[26].mxu0 %vm1765_vm0, %v1932_v30 }
 0xcd7   : > { %4097 = vmatprep.mubr.msk.f32.mxu0 %vm1765_vm0, %v1859_v28 }
 0xcda   : > { %4098 = vmatmul.mubr.msk.f32.vlgmr.msra.gmra.mrb[28].mxu0 %vm1765_vm0, %v1932_v30 }
 0xcdb   : > { %4107 = vmatprep.mubr.msk.f32.mxu0 %vm4493_vm1, %v4492_v17 }
 0xda5   : > { %v2046_v37 = vpop.f32.mrb[24].mxu0 }
 0xda6   : > { %v4944_v33 = vpop.f32.mrb[25].mxu0 }
 0xda9   : > { %v2052_v35 = vpop.f32.mrb[26].mxu0 }
 0xdaa   : > { %v4946_v36 = vpop.f32.mrb[27].mxu0 }
 0xdad   : > { %v4948_v38 = vpop.f32.mrb[28].mxu0 }
 0xdae   : > { %2208 = vrot.lane.b32.xlu0 %v4948_v38, %s4494_s27  ;;  %v2123_v43 = vpop.f32.mrb[29].mxu0 }
 0xdaf   : > { %2133 = vrot.lane.b32.xlu1 %v2123_v43, %s4494_s27 }
 0xdb3   : > { %2283 = vperm.xlu1 %4335, %v2123_v43  }
 0xdb7   : > { %2287 = vperm.xlu1 %4335, %v4948_v38  }
 0xdbb   : > { %4336 = vset.pattern.permute.xlu1 %v4496_v34 }
 0xe20   : > { %v2209_v39 = vpop.permute.xlu0 %2208 }
 0xe21   : > { %4106 = vmatpush3.xpose.msk.msra.mxu0 %vm644_vm2, %v2209_v39  ;;  %v2134_v40 = vpop.permute.xlu1 %2133 }
 0xe22   : > { %4101 = vmatpush3.xpose.msk.msra.mxu1 %vm644_vm2, %v2134_v40  ;;  %4115 = vmatprep.subr.mxu0 %v4492_v17 }
 0xe23   : > { %4110 = vmatprep.subr.mxu1 %v4492_v17 }
 0xe24   : > { %4108 = vmatmul.mubr.msk.f32.vlgmr.msra.gmra.mrb[30].mxu0 %vm644_vm2, %v4495_v32 }
 0xe25   : > { %4103 = vmatmul.mubr.msk.f32.vlgmr.msra.gmra.mrb[14].mxu1 %vm644_vm2, %v4495_v32  ;;  %4116 = vmatpush3.msra.mxu0 %v2052_v35 }
 0xe26   : > { %4111 = vmatpush3.msra.mxu1 %v2046_v37  ;;  %4112 = vmatprep.mubr.msk.f32.mxu1 %vm4493_vm1, %v4492_v17 }
 0xe27   : > { %4120 = vmatprep.subr.mxu1 %v4492_v17  ;;  %4117 = vmatprep.mubr.msk.f32.mxu0 %vm4493_vm1, %v4492_v17 }
 0xe28   : > { %4125 = vmatprep.subr.mxu0 %v4492_v17 }
 0xe32   : > { %v2284_v34 = vpop.permute.xlu1 %2283 }
 0xe36   : > { %v2288_v41 = vpop.permute.xlu1 %2287 }
 0xef7   : > { %v2278_v42 = vpop.f32.mrb[30].mxu0 }
 0xef8   : > { %v2291_v45 = vadd.f32 %v2288_v41, %v2278_v42  ;;  %v2203_v46 = vpop.f32.mrb[14].mxu1  ;;  %v4109_v48 = vpop.f32.mrb[31].mxu0 }
 0xef9   : > { %v2290_v49 = vadd.f32 %v2284_v34, %v2203_v46  ;;  %v4104_v50 = vpop.f32.mrb[15].mxu1 }
 0xefa   : > { %v2295_v51 = vmul.f32 0.2, %v2291_v45  ;;  %vm2293_vm6 = vcmp.gt.f32.partialorder %v2291_v45, 0.0 }
 0xefb   : > { %v2294_v52 = vmul.f32 0.2, %v2290_v49  ;;  %vm2292_vm8 = vcmp.gt.f32.partialorder %v2290_v49, 0.0 }
 0xefc   : > { %v2297_v53 = vsel %vm2293_vm6, %v2291_v45, %v2295_v51 }
 0xefd   : > { %v2301_v54 = vsel %vm2299_vm7, %v2297_v53, -9e+15  ;;  %v2296_v55 = vsel %vm2292_vm8, %v2290_v49, %v2294_v52  ;;  %v1958_v52 = vld [vmem:[%s5251_s7 + $0x80] sm:$0xff]  ;;  %v1959_v53 = vld [vmem:[%s5251_s7 + $0x88] sm:$0xff] }
 0xefe   : > { %v2305_v56 = vsel %vm815_vm5, %v2301_v54, -inf  ;;  %v2300_v57 = vsel %vm2298_vm9, %v2296_v55, -9e+15 }
 0xeff   : > { %2306 = vmax.xlane.f32.xlu1 %v2305_v56  ;;  %v2302_v58 = vsel %vm815_vm5, %v2300_v57, -inf }
 0xf00   : > { %2303 = vmax.xlane.f32.xlu0 %v2302_v58  ;;  %v1943_v58 = vld [vmem:[%s5251_s7 + $0x8] sm:$0xff] }
 0xf10   : > { %2482 = vrot.lane.b32.xlu1 %v2123_v43, %s5261_s20 }
 0xf14   : > { %2631 = vperm.xlu1 %4336, %v2123_v43  }
 0xf18   : > { %2635 = vperm.xlu1 %4336, %v4948_v38  }
 0xf1c   : > { %4337 = vset.pattern.permute.xlu1 %v4498_v1 }
 0xf8c   : > { %v2307_v59 = vpop.xlane.xlu1 %2306 }
 0xf8d   : > { %v2309_v60 = vsub.f32 %v2301_v54, %v2307_v59  ;;  %v2304_v61 = vpop.xlane.xlu0 %2303  ;;  %v4240_v54 = vpack.c.bf16 %v1959_v53, %v1958_v52  ;;  %v1960_v59 = vld [vmem:[%s5251_s7 + $0x90] sm:$0xff] }
 0xf8e   : > { %v2308_v62 = vsub.f32 %v2300_v57, %v2304_v61  ;;  %v1942_v57 = vld [vmem:[%s5251_s7] sm:$0xff] }
 0xf8f   : > { %v2312_v63 = vmul.f32 1.442695, %v2309_v60  ;;  %v1961_v60 = vld [vmem:[%s5251_s7 + $0x98] sm:$0xff] }
 0xf90   : > { %v2310_v0 = vmul.f32 1.442695, %v2308_v62  ;;  %v2483_v9 = vpop.permute.xlu1 %2482  ;;  %v4242_v62 = vpack.c.bf16 %v1943_v58, %v1942_v57 }
 0xf92   : > { %4383 = vpow2.f32 %v2310_v0  ;;  %v4244_v0 = vpack.c.bf16 %v1961_v60, %v1960_v59 }
 0xf93   : > { %4385 = vpow2.f32 %v2312_v63 }
 0xf94   : > { %v2632_v19 = vpop.permute.xlu1 %2631 }
 0xf98   : > { %v2636_v28 = vpop.permute.xlu1 %2635 }
 0xf9c   : > { %v4384_v2 = vpop.eup %4383 }
 0xf9d   : > { %v2314_v3 = vsel %vm815_vm5, %v4384_v2, 0.0  ;;  %v4386_v7 = vpop.eup %4385 }
 0xf9e   : > { %2315 = vadd.xlane.f32.xlu0 %v2314_v3  ;;  %v2317_v4 = vsel %vm815_vm5, %v4386_v7, 0.0  ;;  %v1945_v3 = vld [vmem:[%s5251_s7 + $0x18] sm:$0xff] }
 0xfa2   : > { %2318 = vadd.xlane.f32.xlu0 %v2317_v4  ;;  %v1963_v4 = vld [vmem:[%s5251_s7 + $0xa8] sm:$0xff] }
 0xfb8   : > { %2556 = vrot.lane.b32.xlu0 %v4948_v38, %s5261_s20  ;;  %s3858_s20 = sshll.u32 %s4579_s17, 8 }
 0xfb9   : > { %s5201_s28 = scalar_lea.hbm %s5254_s10, %s3858_s20 }
0x102b   : > { %v2316_v5 = vpop.xlane.xlu0 %2315 }
0x102c   : > { %4387 = vrcp.f32 %v2316_v5 }
0x102f   : > { %v2319_v6 = vpop.xlane.xlu0 %2318 }
0x1030   : > { %4389 = vrcp.f32 %v2319_v6 }
0x1033   : > { %v2557_v15 = vpop.permute.xlu0 %2556 }
0x1036   : > { %v4388_v11 = vpop.eup %4387 }
0x1037   : > { %v2321_v8 = vmul.f32 %v4388_v11, %v4384_v2  ;;  %v1944_v2 = vld [vmem:[%s5251_s7 + $0x10] sm:$0xff] }
0x1038   : > { %v4246_v6 = vpack.c.bf16 %v1945_v3, %v1944_v2 }
0x1039   : > { %4113 = vmatmul.mubr.msk.f32.vlgmr.msra.gmra.mrb[16].mxu1 %vm815_vm5, %v2321_v8 }
0x103a   : > { %v4390_v10 = vpop.eup %4389  ;;  %4121 = vmatpush3.xpose.msk.msra.mxu1 %vm644_vm2, %v2483_v9  ;;  %4122 = vmatprep.mubr.msk.f32.mxu1 %vm4493_vm1, %v4492_v17  ;;  %v1946_v9 = vld [vmem:[%s5251_s7 + $0x20] sm:$0xff] }
0x103b   : > { %v2323_v14 = vmul.f32 %v4390_v10, %v4386_v7  ;;  %4130 = vmatprep.subr.mxu1 %v4492_v17  ;;  %v1962_v7 = vld [vmem:[%s5251_s7 + $0xa0] sm:$0xff]  ;;  %v1947_v10 = vld [vmem:[%s5251_s7 + $0x28] sm:$0xff] }
0x103c   : > { %v4248_v8 = vpack.c.bf16 %v1963_v4, %v1962_v7 }
0x103d   : > { %4118 = vmatmul.mubr.msk.f32.vlgmr.msra.gmra.mrb[32].mxu0 %vm815_vm5, %v2323_v14  ;;  %4123 = vmatmul.mubr.msk.f32.vlgmr.msra.gmra.mrb[18].mxu1 %vm644_vm2, %v4495_v32  ;;  %v4250_v14 = vpack.c.bf16 %v1947_v10, %v1946_v9 }
0x103e   : > { %4126 = vmatpush3.xpose.msk.msra.mxu0 %vm644_vm2, %v2557_v15  ;;  %4131 = vmatpush3.msra.mxu1 %v4944_v33  ;;  %v1964_v15 = vld [vmem:[%s5251_s7 + $0xb0] sm:$0xff] }
0x103f   : > { %4127 = vmatprep.mubr.msk.f32.mxu0 %vm4493_vm1, %v4492_v17  ;;  %4135 = vmatprep.subr.mxu0 %v4492_v17 }
0x1040   : > { %4132 = vmatprep.mubr.msk.f32.mxu1 %vm4493_vm1, %v4492_v17  ;;  %4241 = vmatprep.subr.bf16.mxu1 %v4240_v54 }
0x1041   : > { %4128 = vmatmul.mubr.msk.f32.vlgmr.msra.gmra.mrb[34].mxu0 %vm644_vm2, %v4495_v32 }
0x1042   : > { %4136 = vmatpush3.msra.mxu0 %v4946_v36  ;;  %4137 = vmatprep.mubr.msk.f32.mxu0 %vm4493_vm1, %v4492_v17 }
0x1043   : > { %4140 = vmatprep.subr.mxu0 %v4492_v17 }
0x110c   : > { %v5013_v16 = vpop.f32.mrb[16].mxu1 }
0x110d   : > { %v4114_v18 = vpop.f32.mrb[17].mxu1  ;;  %v2472_v53 = vmin.f32 %v5013_v16, 0.0  ;;  %vm2470_vm13 = vcmp.gt.f32.partialorder %v5013_v16, 0.0 }
0x110e   : > { %v1965_v18 = vld [vmem:[%s5251_s7 + $0xb8] sm:$0xff] }
0x110f   : > { %v2474_v54 = vmul.f32 1.442695, %v2472_v53 }
0x1110   : > { %v5015_v20 = vpop.f32.mrb[32].mxu0  ;;  %v2552_v21 = vpop.f32.mrb[18].mxu1 }
0x1111   : > { %v2638_v24 = vadd.f32 %v2632_v19, %v2552_v21  ;;  %v4119_v25 = vpop.f32.mrb[33].mxu0  ;;  %v4124_v26 = vpop.f32.mrb[19].mxu1  ;;  %v4252_v19 = vpack.c.bf16 %v1965_v18, %v1964_v15  ;;  %v1948_v21 = vld [vmem:[%s5251_s7 + $0x30] sm:$0xff]  ;;  %vm2471_vm15 = vcmp.gt.f32.partialorder %v5015_v20, 0.0 }
0x1112   : > { %v1966_v26 = vld [vmem:[%s5251_s7 + $0xc0] sm:$0xff] }
0x1113   : > { %v2642_v27 = vmul.f32 0.2, %v2638_v24  ;;  %vm2640_vm10 = vcmp.gt.f32.partialorder %v2638_v24, 0.0 }
0x1114   : > { %v2626_v29 = vpop.f32.mrb[34].mxu0 }
0x1115   : > { %v2639_v30 = vadd.f32 %v2636_v28, %v2626_v29  ;;  %v2644_v31 = vsel %vm2640_vm10, %v2638_v24, %v2642_v27  ;;  %v4129_v37 = vpop.f32.mrb[35].mxu0  ;;  %v1949_v24 = vld [vmem:[%s5251_s7 + $0x38] sm:$0xff]  ;;  %v1967_v27 = vld [vmem:[%s5251_s7 + $0xc8] sm:$0xff]  ;;  %v1950_v29 = vld [vmem:[%s5251_s7 + $0x40] sm:$0xff] }
0x1116   : > { %v2646_v33 = vsel %vm2298_vm9, %v2644_v31, -9e+15  ;;  %v4254_v25 = vpack.c.bf16 %v1949_v24, %v1948_v21  ;;  %v4256_v28 = vpack.c.bf16 %v1967_v27, %v1966_v26  ;;  %v1968_v37 = vld [vmem:[%s5251_s7 + $0xd0] sm:$0xff] }
0x1117   : > { %v2643_v35 = vmul.f32 0.2, %v2639_v30  ;;  %v2648_v36 = vsel %vm815_vm5, %v2646_v33, -inf  ;;  %vm2641_vm11 = vcmp.gt.f32.partialorder %v2639_v30, 0.0 }
0x1118   : > { %2649 = vmax.xlane.f32.xlu0 %v2648_v36  ;;  %v1952_v36 = vld [vmem:[%s5251_s7 + $0x50] sm:$0xff] }
0x1119   : > { %v2645_v38 = vsel %vm2641_vm11, %v2639_v30, %v2643_v35  ;;  %v1951_v30 = vld [vmem:[%s5251_s7 + $0x48] sm:$0xff] }
0x111a   : > { %v2647_v43 = vsel %vm2299_vm7, %v2645_v38, -9e+15  ;;  %v4258_v31 = vpack.c.bf16 %v1951_v30, %v1950_v29  ;;  %v1953_v38 = vld [vmem:[%s5251_s7 + $0x58] sm:$0xff] }
0x111b   : > { %v2651_v39 = vsel %vm815_vm5, %v2647_v43, -inf }
0x111c   : > { %2652 = vmax.xlane.f32.xlu1 %v2651_v39  ;;  %v1970_v39 = vld [vmem:[%s5251_s7 + $0xe0] sm:$0xff] }
0x11a5   : > { %v2650_v40 = vpop.xlane.xlu0 %2649 }
0x11a6   : > { %v2654_v34 = vsub.f32 %v2646_v33, %v2650_v40  ;;  %v1969_v33 = vld [vmem:[%s5251_s7 + $0xd8] sm:$0xff]  ;;  %v1971_v40 = vld [vmem:[%s5251_s7 + $0xe8] sm:$0xff] }
0x11a7   : > { %v4260_v35 = vpack.c.bf16 %v1969_v33, %v1968_v37 }
0x11a8   : > { %v2656_v41 = vmul.f32 1.442695, %v2654_v34  ;;  %v1954_v34 = vld [vmem:[%s5251_s7 + $0x60] sm:$0xff] }
0x11a9   : > { %v2653_v42 = vpop.xlane.xlu1 %2652 }
0x11aa   : > { %4391 = vpow2.f32 %v2656_v41  ;;  %v2655_v45 = vsub.f32 %v2647_v43, %v2653_v42  ;;  %v4262_v43 = vpack.c.bf16 %v1953_v38, %v1952_v36  ;;  %v4264_v41 = vpack.c.bf16 %v1971_v40, %v1970_v39  ;;  %v1955_v42 = vld [vmem:[%s5251_s7 + $0x68] sm:$0xff] }
0x11ac   : > { %v2658_v46 = vmul.f32 1.442695, %v2655_v45  ;;  %v1972_v45 = vld [vmem:[%s5251_s7 + $0xf0] sm:$0xff] }
0x11ae   : > { %4393 = vpow2.f32 %v2658_v46  ;;  %v1973_v46 = vld [vmem:[%s5251_s7 + $0xf8] sm:$0xff] }
0x11b4   : > { %v4392_v48 = vpop.eup %4391 }
0x11b5   : > { %v2660_v49 = vsel %vm815_vm5, %v4392_v48, 0.0 }
0x11b6   : > { %2661 = vadd.xlane.f32.xlu0 %v2660_v49  ;;  %v4268_v49 = vpack.c.bf16 %v1973_v46, %v1972_v45 }
0x11b8   : > { %v4394_v50 = vpop.eup %4393 }
0x11b9   : > { %v2663_v51 = vsel %vm815_vm5, %v4394_v50, 0.0 }
0x11ba   : > { %2664 = vadd.xlane.f32.xlu0 %v2663_v51  ;;  %v1957_v51 = vld [vmem:[%s5251_s7 + $0x78] sm:$0xff] }
0x1243   : > { %v2662_v55 = vpop.xlane.xlu0 %2661 }
0x1244   : > { %4395 = vrcp.f32 %v2662_v55  ;;  %v2473_v55 = vmin.f32 %v5015_v20, 0.0 }
0x1246   : > { %v2476_v59 = vmul.f32 1.442695, %v2473_v55 }
0x1247   : > { %v2665_v56 = vpop.xlane.xlu0 %2664 }
0x1248   : > { %4397 = vrcp.f32 %v2665_v56 }
0x1249   : > { %4399 = vpow2.f32 %v2474_v54 }
0x124e   : > { %v4396_v61 = vpop.eup %4395 }
0x124f   : > { %v2667_v63 = vmul.f32 %v4396_v61, %v4392_v48  ;;  %v4266_v48 = vpack.c.bf16 %v1955_v42, %v1954_v34 }
0x1251   : > { %4133 = vmatmul.mubr.msk.f32.vlgmr.msra.gmra.mrb[20].mxu1 %vm815_vm5, %v2667_v63 }
0x1252   : > { %v4398_v5 = vpop.eup %4397  ;;  %4243 = vmatpush3.bf16.msra.mxu1 %v4242_v62 }
0x1253   : > { %v2669_v11 = vmul.f32 %v4398_v5, %v4394_v50  ;;  %4245 = vmatprep.subr.bf16.mxu1 %v4244_v0  ;;  %v1956_v50 = vld [vmem:[%s5251_s7 + $0x70] sm:$0xff]  ;;  %v4400_v2 = vpop.eup %4399 }
0x1254   : > { %v4270_v52 = vpack.c.bf16 %v1957_v51, %v1956_v50  ;;  %v3828_v7 = vadd.f32 -1.0, %v4400_v2 }
0x1255   : > { %4138 = vmatmul.mubr.msk.f32.vlgmr.msra.gmra.mrb[36].mxu0 %vm815_vm5, %v2669_v11 }
0x1256   : > { %4247 = vmatpush3.bf16.msra.mxu1 %v4246_v6  ;;  %4142 = vmatprep.mubr.msk.f32.mxu0 %vm4493_vm1, %v4492_v17 }
0x1257   : > { %4249 = vmatprep.subr.bf16.mxu1 %v4248_v8  ;;  %v2480_v8 = vsel %vm2470_vm13, %v5013_v16, %v3828_v7 }
0x125a   : > { %4251 = vmatpush3.bf16.msra.mxu1 %v4250_v14 }
0x125b   : > { %4253 = vmatprep.subr.bf16.mxu1 %v4252_v19 }
0x125e   : > { %4255 = vmatpush3.bf16.msra.mxu1 %v4254_v25 }
0x125f   : > { %4257 = vmatprep.subr.bf16.mxu1 %v4256_v28 }
0x1262   : > { %4259 = vmatpush3.bf16.msra.mxu1 %v4258_v31 }
0x1263   : > { %4261 = vmatprep.subr.bf16.mxu1 %v4260_v35 }
0x1266   : > { %4263 = vmatpush3.bf16.msra.mxu1 %v4262_v43 }
0x1267   : > { %4265 = vmatprep.subr.bf16.mxu1 %v4264_v41 }
0x126a   : > { %4267 = vmatpush3.bf16.msra.mxu1 %v4266_v48 }
0x126b   : > { %4269 = vmatprep.subr.bf16.mxu1 %v4268_v49 }
0x126e   : > { %4271 = vmatpush3.bf16.msra.mxu1 %v4270_v52 }
0x1324   : > { %v2739_v56 = vpop.f32.mrb[20].mxu1 }
0x1325   : > { %v2818_v57 = vmin.f32 %v2739_v56, 0.0  ;;  %v4134_v58 = vpop.f32.mrb[21].mxu1  ;;  %vm2816_vm12 = vcmp.gt.f32.partialorder %v2739_v56, 0.0 }
0x1327   : > { %v2820_v60 = vmul.f32 1.442695, %v2818_v57 }
0x1328   : > { %v2812_v61 = vpop.f32.mrb[36].mxu0 }
0x1329   : > { %4401 = vpow2.f32 %v2820_v60  ;;  %v2819_v62 = vmin.f32 %v2812_v61, 0.0  ;;  %v4139_v63 = vpop.f32.mrb[37].mxu0  ;;  %vm2817_vm14 = vcmp.gt.f32.partialorder %v2812_v61, 0.0 }
0x132a   : > { %4403 = vpow2.f32 %v2476_v59 }
0x132b   : > { %v2822_v0 = vmul.f32 1.442695, %v2819_v62 }
0x132d   : > { %4405 = vpow2.f32 %v2822_v0 }
0x1333   : > { %v4402_v3 = vpop.eup %4401 }
0x1334   : > { %v4404_v4 = vpop.eup %4403  ;;  %v3836_v5 = vadd.f32 -1.0, %v4402_v3 }
0x1335   : > { %v3829_v9 = vadd.f32 -1.0, %v4404_v4 }
0x1336   : > { %v2826_v6 = vsel %vm2816_vm12, %v2739_v56, %v3836_v5 }
0x1337   : > { %v4406_v11 = vpop.eup %4405  ;;  %2892 = vmatprep.mubr.f32.mxu1 %v2826_v6  ;;  %v2481_v15 = vsel %vm2471_vm15, %v5015_v20, %v3829_v9 }
0x1338   : > { %2893 = vmatmul.mubr.f32.vlgmr.msra.gmra.mrb[22].mxu1 %v2480_v8  ;;  %v3837_v10 = vadd.f32 -1.0, %v4406_v11 }
0x133a   : > { %v2827_v14 = vsel %vm2817_vm14, %v2812_v61, %v3837_v10 }
0x133b   : > { %2897 = vmatprep.mubr.f32.mxu1 %v2827_v14 }
0x133c   : > { %2898 = vmatmul.mubr.f32.gmra.mrb[24].mxu1 %v2481_v15 }
0x140b   : > { %v3984_v18 = vpop.f32.mrb[22].mxu1 }
0x140c   : > { %v3985_v19 = vpop.f32.mrb[23].mxu1 }
0x140d   : > { %v3986_v21 = vadd.f32 %v3985_v19, %v3984_v18 }
0x140f   : > { %2904 = vrot.lane.b32.xlu1 %v3986_v21, %s4499_s25  ;;  %v3987_v24 = vpop.f32.mrb[24].mxu1 }
0x1410   : > { %v3988_v25 = vpop.f32.mrb[25].mxu1 }
0x1411   : > { %v3989_v26 = vadd.f32 %v3988_v25, %v3987_v24 }
0x1413   : > { %3054 = vperm.xlu1 %4337, %v3986_v21   ;;  %2979 = vrot.lane.b32.xlu0 %v3989_v26, %s4499_s25  ;;  %s401_s25 = scalar_lea.vmem [#allocation2], %s3779_s18  ;;  %s4431_s18 = sshll.u32 %s4500_s12, 4  ;;  %s4432_s18 = int_to_ptr.vmem [resolvable:$false] %s4431_s18 }
0x1414   : > { %s3677_s0 = sshll.u32 %s401_s25, 4  ;;  %s4433_s27 = scalar_lea.vmem %s4432_s18, 512  ;;  %s5196_s0 = int_to_ptr.vmem [resolvable:$true] %s3677_s0 }
0x1415   : > { %s4427_s17 = scalar_lea.vmem %s5196_s0, 256  ;;  %p4434_p0 = scmp.lt.s32.totalorder %s5196_s0, %s4432_s18 }
0x1416   : > { %p4428_p11 = scmp.ne.s32.totalorder %s5196_s0, %s4427_s17  ;;  %p4435_p1 = scmp.lt.s32.totalorder %s4433_s27, %s4427_s17 }
0x1417   : > { %3058 = vperm.xlu1 %4337, %v3989_v26  }
0x1418   : > { %p4429_p12 = pnand %p4428_p11, %p4596_p5  ;;  %p4436_p2 = por %p4435_p1, %p4434_p0 }
0x141a   : > { %p4430_p13 = pneg %p4429_p12 }
0x141c   : > { %p4437_p3 = pnand %p4436_p2, %p4430_p13 }
0x1481   : > { %v2905_v16 = vpop.permute.xlu1 %2904 }
0x1482   : > { %4141 = vmatpush3.xpose.msk.msra.mxu0 %vm644_vm2, %v2905_v16 }
0x1483   : > { %4145 = vmatprep.subr.mxu0 %v4492_v17 }
0x1485   : > { %4143 = vmatmul.mubr.msk.f32.vlgmr.msra.gmra.mrb[38].mxu0 %vm644_vm2, %v4495_v32  ;;  %v2980_v20 = vpop.permute.xlu0 %2979 }
0x1486   : > { %4146 = vmatpush3.xpose.msk.msra.mxu0 %vm644_vm2, %v2980_v20  ;;  %4147 = vmatprep.mubr.msk.f32.mxu0 %vm4493_vm1, %v4492_v17 }
0x1487   : > { %4150 = vmatprep.subr.mxu0 %v4492_v17 }
0x1489   : > { %4148 = vmatmul.mubr.msk.f32.vlgmr.msra.gmra.mrb[40].mxu0 %vm644_vm2, %v4495_v32 }
0x148a   : > { %4151 = vmatpush3.msra.mxu0 %v3986_v21  ;;  %4152 = vmatprep.mubr.msk.f32.mxu0 %vm4493_vm1, %v4492_v17 }
0x148b   : > { %4155 = vmatprep.subr.mxu0 %v4492_v17 }
0x1492   : > { %v3055_v27 = vpop.permute.xlu1 %3054 }
0x1496   : > { %v3059_v37 = vpop.permute.xlu1 %3058 }
0x1558   : > { %v2974_v28 = vpop.f32.mrb[38].mxu0 }
0x1559   : > { %v3061_v29 = vadd.f32 %v3055_v27, %v2974_v28  ;;  %v4144_v30 = vpop.f32.mrb[39].mxu0 }
0x155b   : > { %v3065_v31 = vmul.f32 0.2, %v3061_v29  ;;  %vm3063_vm3 = vcmp.gt.f32.partialorder %v3061_v29, 0.0 }
0x155c   : > { %v3049_v33 = vpop.f32.mrb[40].mxu0 }
0x155d   : > { %v3062_v35 = vadd.f32 %v3059_v37, %v3049_v33  ;;  %v3067_v36 = vsel %vm3063_vm3, %v3061_v29, %v3065_v31  ;;  %v4149_v38 = vpop.f32.mrb[41].mxu0 }
0x155e   : > { %v3069_v32 = vsel %vm2298_vm9, %v3067_v36, -9e+15 }
0x155f   : > { %v3066_v43 = vmul.f32 0.2, %v3062_v35  ;;  %v3071_v39 = vsel %vm815_vm5, %v3069_v32, -inf  ;;  %vm3064_vm2 = vcmp.gt.f32.partialorder %v3062_v35, 0.0 }
0x1560   : > { %3072 = vmax.xlane.f32.xlu0 %v3071_v39 }
0x1561   : > { %v3068_v40 = vsel %vm3064_vm2, %v3062_v35, %v3066_v43  ;;  %v3486_v43 = vld [vmem:[%s5252_s8 + $0x8] sm:$0xff] }
0x1562   : > { %v3070_v34 = vsel %vm2299_vm7, %v3068_v40, -9e+15 }
0x1563   : > { %v3074_v41 = vsel %vm815_vm5, %v3070_v34, -inf }
0x1564   : > { %3075 = vmax.xlane.f32.xlu1 %v3074_v41 }
0x15ed   : > { %v3073_v42 = vpop.xlane.xlu0 %3072 }
0x15ee   : > { %v3077_v45 = vsub.f32 %v3069_v32, %v3073_v42  ;;  %v3485_v32 = vld [vmem:[%s5252_s8] sm:$0xff] }
0x15ef   : > { %v4276_v39 = vpack.c.bf16 %v3486_v43, %v3485_v32  ;;  %v3852_v42 = vld [vmem:[%s5253_s9] ss:$0 sm:$0xff] }
0x15f0   : > { %v3079_v46 = vmul.f32 1.442695, %v3077_v45 }
0x15f1   : > { %v3076_v48 = vpop.xlane.xlu1 %3075 }
0x15f2   : > { %4407 = vpow2.f32 %v3079_v46  ;;  %v3078_v49 = vsub.f32 %v3070_v34, %v3076_v48 }
0x15f4   : > { %v3081_v47 = vmul.f32 1.442695, %v3078_v49 }
0x15f6   : > { %4409 = vpow2.f32 %v3081_v47 }
0x15fc   : > { %v4408_v50 = vpop.eup %4407 }
0x15fd   : > { %v3083_v51 = vsel %vm815_vm5, %v4408_v50, 0.0 }
0x15fe   : > { %3084 = vadd.xlane.f32.xlu0 %v3083_v51 }
0x1600   : > { %v4410_v52 = vpop.eup %4409 }
0x1601   : > { %v3086_v53 = vsel %vm815_vm5, %v4410_v52, 0.0 }
0x1602   : > { %3087 = vadd.xlane.f32.xlu0 %v3086_v53 }
0x168b   : > { %v3085_v44 = vpop.xlane.xlu0 %3084 }
0x168c   : > { %4411 = vrcp.f32 %v3085_v44 }
0x168f   : > { %v3088_v54 = vpop.xlane.xlu0 %3087 }
0x1690   : > { %4413 = vrcp.f32 %v3088_v54 }
0x1696   : > { %v4412_v55 = vpop.eup %4411 }
0x1697   : > { %v3090_v56 = vmul.f32 %v4412_v55, %v4408_v50 }
0x1699   : > { %4153 = vmatmul.mubr.msk.f32.vlgmr.msra.gmra.mrb[42].mxu0 %vm815_vm5, %v3090_v56 }
0x169a   : > { %v4414_v57 = vpop.eup %4413  ;;  %4156 = vmatpush3.msra.mxu0 %v3989_v26  ;;  %4157 = vmatprep.mubr.msk.f32.mxu0 %vm4493_vm1, %v4492_v17 }
0x169b   : > { %v3092_v58 = vmul.f32 %v4414_v57, %v4410_v52  ;;  %4160 = vmatprep.subr.mxu0 %v4492_v17 }
0x169d   : > { %4158 = vmatmul.mubr.msk.f32.vlgmr.msra.gmra.mrb[44].mxu0 %vm815_vm5, %v3092_v58 }
0x169e   : > { %4162 = vmatprep.mubr.msk.f32.mxu0 %vm4493_vm1, %v4492_v17 }
0x176c   : > { %v3162_v59 = vpop.f32.mrb[42].mxu0 }
0x176d   : > { %v3241_v60 = vmin.f32 %v3162_v59, 0.0  ;;  %v4154_v61 = vpop.f32.mrb[43].mxu0  ;;  %vm3239_vm4 = vcmp.gt.f32.partialorder %v3162_v59, 0.0 }
0x176f   : > { %v3243_v62 = vmul.f32 1.442695, %v3241_v60 }
0x1770   : > { %v3235_v63 = vpop.f32.mrb[44].mxu0 }
0x1771   : > { %4415 = vpow2.f32 %v3243_v62  ;;  %v3242_v0 = vmin.f32 %v3235_v63, 0.0  ;;  %v4159_v2 = vpop.f32.mrb[45].mxu0  ;;  %vm3240_vm6 = vcmp.gt.f32.partialorder %v3235_v63, 0.0 }
0x1773   : > { %v3245_v3 = vmul.f32 1.442695, %v3242_v0 }
0x1775   : > { %4417 = vpow2.f32 %v3245_v3 }
0x177b   : > { %v4416_v7 = vpop.eup %4415 }
0x177c   : > { %v3844_v4 = vadd.f32 -1.0, %v4416_v7 }
0x177e   : > { %v3249_v5 = vsel %vm3239_vm4, %v3162_v59, %v3844_v4 }
0x177f   : > { %v4418_v6 = vpop.eup %4417  ;;  %v3251_v11 = vsel %vm1765_vm0, %v3249_v5, -inf }
0x1780   : > { %3252 = vmax.xlane.f32.xlu1 %v3251_v11  ;;  %v3845_v8 = vadd.f32 -1.0, %v4418_v6 }
0x1782   : > { %v3250_v9 = vsel %vm3240_vm6, %v3235_v63, %v3845_v8 }
0x1783   : > { %v3254_v10 = vsel %vm1765_vm0, %v3250_v9, -inf }
0x1784   : > { %3255 = vmax.xlane.f32.xlu0 %v3254_v10 }
0x180d   : > { %v3253_v14 = vpop.xlane.xlu1 %3252 }
0x180e   : > { %v3257_v15 = vsub.f32 %v3249_v5, %v3253_v14 }
0x1810   : > { %v3259_v18 = vmul.f32 1.442695, %v3257_v15 }
0x1811   : > { %v3256_v19 = vpop.xlane.xlu0 %3255 }
0x1812   : > { %4419 = vpow2.f32 %v3259_v18  ;;  %v3258_v21 = vsub.f32 %v3250_v9, %v3256_v19 }
0x1814   : > { %v3261_v24 = vmul.f32 1.442695, %v3258_v21 }
0x1816   : > { %4421 = vpow2.f32 %v3261_v24 }
0x181c   : > { %v4420_v25 = vpop.eup %4419 }
0x181d   : > { %v3263_v26 = vsel %vm1765_vm0, %v4420_v25, 0.0 }
0x181e   : > { %3264 = vadd.xlane.f32.xlu1 %v3263_v26 }
0x1820   : > { %v4422_v16 = vpop.eup %4421 }
0x1821   : > { %v3266_v20 = vsel %vm1765_vm0, %v4422_v16, 0.0 }
0x1822   : > { %3267 = vadd.xlane.f32.xlu0 %v3266_v20 }
0x184f   : > { %3380 = vxpose.xlu0.b32.start.end [1/1] (short) (narrow) %v4924_v23, 8  ;;  %v3487_v23 = vld [vmem:[%s5252_s8 + $0x10] sm:$0xff] }
0x1851   : > { %3275 = vxpose.xlu1.b32.start.end [1/1] (short) (narrow) %v4902_v13, 8 }
0x1878   : > { %4338 = vset.pattern.permute.xlu0 %v4498_v1  ;;  %v3488_v1 = vld [vmem:[%s5252_s8 + $0x18] sm:$0xff] }
0x1879   : > { %v4272_v13 = vpack.c.bf16 %v3488_v1, %v3487_v23 }
0x18ab   : > { %v3265_v27 = vpop.xlane.xlu1 %3264 }
0x18ac   : > { %4423 = vlog2.f32 %v3265_v27 }
0x18af   : > { %v3268_v31 = vpop.xlane.xlu0 %3267 }
0x18b0   : > { %4425 = vlog2.f32 %v3268_v31 }
0x18b6   : > { %v4424_v28 = vpop.eup %4423 }
0x18b7   : > { %v3270_v29 = vmul.f32 0.6931472, %v4424_v28 }
0x18b9   : > { %v3273_v30 = vsub.f32 %v3257_v15, %v3270_v29 }
0x18ba   : > { %v4426_v37 = vpop.eup %4425 }
0x18bb   : > { %4161 = vmatpush3.msra.mxu0 %v3273_v30  ;;  %v3272_v33 = vmul.f32 0.6931472, %v4426_v37 }
0x18bc   : > { %4165 = vmatprep.subr.mxu0 %v4492_v17 }
0x18bd   : > { %v3274_v35 = vsub.f32 %v3258_v21, %v3272_v33 }
0x18cf   : > { %v3396_v38 = vpop.trf.xlu0 }
0x18d1   : > { %v3291_v36 = vpop.trf.xlu1 }
0x18d2   : > { %4163 = vmatmul.mubr.msk.f32.vlgmr.msra.gmra.mrb[46].mxu0 %vm815_vm5, %v3291_v36 }
0x18d3   : > { %4166 = vmatpush3.msra.mxu0 %v3274_v35  ;;  %4167 = vmatprep.mubr.msk.f32.mxu0 %vm4493_vm1, %v4492_v17  ;;  %vm3660_vm1 = vcmask 195584  }
0x18d4   : > { %4273 = vmatprep.subr.bf16.mxu0 %v4272_v13 }
0x18d6   : > { %4168 = vmatmul.mubr.msk.f32.vlgmr.msra.gmra.mrb[48].mxu0 %vm815_vm5, %v3396_v38 }
0x18d7   : > { %4275 = vmatpush3.bf16.msra.mxu0 %v4272_v13 }
0x18d8   : > { %4277 = vmatprep.subr.bf16.mxu0 %v4276_v39 }
0x19a5   : > { %v3376_v40 = vpop.f32.mrb[46].mxu0 }
0x19a6   : > { %v4164_v34 = vpop.f32.mrb[47].mxu0  ;;  %4174 = vmatprep.mubr.msk.f32.mxu0 %vm1765_vm0, %v3376_v40 }
0x19a9   : > { %v3481_v17 = vpop.f32.mrb[48].mxu0 }
0x19aa   : > { %4175 = vmatmul.mubr.msk.f32.vlgmr.msra.gmra.mrb[50].mxu0 %vm1765_vm0, %v3481_v17  ;;  %v4169_v41 = vpop.f32.mrb[49].mxu0 }
0x19ab   : > { %4181 = vmatprep.mubr.msk.f32.mxu0 %vm1765_vm0, %v4900_v12  ;;  %4279 = vmatpush3.bf16.msra.mxu0 %v4276_v39 }
0x19b2   : > { %4182 = vmatmul.mubr.msk.f32.vlgmr.msra.gmra.mrb[50].mxu0 %vm1765_vm0, %v4920_v22 }
0x1a85   : > { %v4183_v45 = vpop.f32.mrb[50].mxu0 }
0x1a86   : > { %v3659_v46 = vadd.f32 %v4183_v45, %v3852_v42  ;;  %v3642_v12 = vpop.f32.mrb[51].mxu0 }
0x1a87   : > { %v3658_v22 = vadd.f32 %v3852_v42, %v3642_v12 }
0x1a88   : > { %3662 = vst.msk [vmem:[%s401_s25 + $0x8] sm:$0xff] %vm3660_vm1, %v3659_v46 }
0x1a89   : > { %3661 = vst.msk [vmem:[%s401_s25] sm:$0xff] %vm3660_vm1, %v3658_v22 }
0x1a8a   : > { %4440 = shalt.err (!%p4437_p3)
}
0x1a8b   : > { %s4441_s11 = scalar_lea.hbm %s5201_s28, 256  ;;  %s4445_s20 = scalar_lea.hbm %s5254_s10, 512 }
0x1a8c   : > { %p4442_p4 = scmp.ne.s32.totalorder %s5201_s28, %s4441_s11  ;;  %p4446_p9 = scmp.lt.u32.totalorder %s5201_s28, %s5254_s10 }
0x1a8d   : > { %p4447_p10 = scmp.lt.u32.totalorder %s4445_s20, %s4441_s11  ;;  %p4449_p12 = scmp.lt.u32.totalorder %s4441_s11, %s5201_s28 }
0x1a8e   : > { %p4443_p7 = pnand %p4442_p4, %p4596_p5 }
0x1a8f   : > { %p4448_p11 = por %p4447_p10, %p4446_p9 }
0x1a90   : > { %p4444_p8 = pneg %p4443_p7 }
0x1a91   : > { %p4450_p13 = por %p4449_p12, %p4448_p11 }
0x1a93   : > { %p4451_p0 = pnand %p4450_p13, %p4444_p8 }
0x1a95   : > { %4454 = shalt.err (!%p4451_p0)
}
0x1a96   : > { %s4501_s17 = smov 128   ;;  %s4502_s12 = smov 8  }
0x1a97   : > { %4282 = dma.vmem_to_hbm [thread:$0]  (%p4596_p5), %s5196_s0, 256, %s5201_s28, %s5203_s30, %s4501_s17, %s4501_s17, %s4502_s12  }
0x1a98 PF: > { %p4288_p1 = scmp.ge.s32.totalorder %s4489_s16, 2  ;;  %s3692_s18 = sand.u32 1, %s4477_s13  }
0x1a99   : > { %s3693_s27 = scalar_lea.sflag [#allocation3], %s3692_s18 }
0x1a9a   : > { %p4285_p2 = pnand %p4288_p1, %p4600_p6 }
0x1a9c   : > { %4472 = dma.done.wait (!%p4285_p2), %s3693_s27, 256  }
0x1a9d   : > { %4474 = vsyncadd (!%p4285_p2), %s3693_s27, 4294967040  ;;  %p20_p3 = scmp.ge.s32.totalorder %s4583_s19, 4   ;;  %s5262_s13 = smov %s4481_s14 }
0x1a9e   : > { %s5263_s14 = smov %s4485_s15  ;;  %s5264_s15 = smov %s4594_s22 }
0x1a9f   : > { %s5265_s16 = smov %s4583_s19  ;;  %22 = sbr.rel (!%p20_p3) target bundleno = 5 (0x5), region = 104 }
0x1aa6   :  { %3698 = vsyncpa [#allocation3], 1 }
0x1aa7   :  { %3700 = vsyncpa [#allocation3 + $0x1], 1 }

</bundles_post_ra>
